<compile_context>
chip_gen: v5e
topology: v5e:2x2
jax: 0.10.0
libtpu: 0.0.40
codegen_flags: <defaults>
</compile_context>

<pallas_src>
import math
import functools

import jax
import jax.numpy as jnp
from jax import lax
from jax.experimental import pallas as pl
from jax.experimental.pallas import tpu as pltpu


# --------------------------------------------------------------------------- kernel
def _bottleneck_kernel(H, W, Cp, Cexp,
                       xp_ref, mask_ref, w1_ref, w2_ref, w3_ref,
                       s1_ref, b1_ref, s2_ref, b2_ref, s3_ref, b3_ref,
                       o_ref, o1_scr):
    """Fused pruned bottleneck for one image.

    xp_ref : (1, H+2, W+2, Cin)  spatially zero-padded input (compute dtype)
    mask_ref: (R*P, 1) f32       1.0 on interior positions, 0.0 on the pad ring
    w1_ref : (Cin, Cp)           conv1 as matmul
    w2_ref : (9, Cp, Cp)         conv2 taps, index = kh*3 + kw, each (Cin=Cp, Cout=Cp)
    w3_ref : (Cp, Cexp)          conv3 as matmul
    s*/b*  : (1, C) f32          folded BatchNorm scale / bias
    o_ref  : (1, H, W, Cexp)
    o1_scr : ((H+3)*(W+2), Cp)   VMEM scratch for the padded conv1 output (flat layout)
    """
    R, P = H + 2, W + 2
    f32 = jnp.float32
    cdt = xp_ref.dtype
    Cin = xp_ref.shape[3]

    # ---- conv1 (1x1) + bn1 + relu on the full padded slab; mask kills the pad ring ----
    x_flat = xp_ref[0].reshape(R * P, Cin)                                    # compute dtype
    lin1 = jnp.dot(x_flat, w1_ref[...], preferred_element_type=f32)           # (R*P, Cp) f32
    out1 = jnp.maximum(lin1 * s1_ref[...] + b1_ref[...], 0.0) * mask_ref[...]
    o1_scr[0:R * P, :] = out1.astype(cdt)
    o1_scr[R * P:, :] = jnp.zeros((o1_scr.shape[0] - R * P, Cp), cdt)          # zero tail rows

    # ---- conv2 (3x3, pad=1, stride=1) + bn2 + relu: 9 shifted-row matmuls in VMEM ----
    # acc2 row i = ho*P + t holds the conv2 output at (ho, wo=t); columns t in {W, W+1}
    # are junk and are sliced off at the end.
    acc2 = jnp.zeros((H * P, Cp), f32)
    for kh in range(3):
        for kw in range(3):
            off = kh * P + kw
            a = o1_scr[off:off + H * P, :]
            acc2 = acc2 + jnp.dot(a, w2_ref[kh * 3 + kw], preferred_element_type=f32)
    out2 = jnp.maximum(acc2 * s2_ref[...] + b2_ref[...], 0.0)                  # (H*P, Cp) f32

    # ---- conv3 (1x1) + bn3 + identity residual + relu ----
    acc3 = jnp.dot(out2.astype(cdt), w3_ref[...], preferred_element_type=f32)  # (H*P, Cexp)
    y = (acc3 * s3_ref[...] + b3_ref[...]).reshape(H, P, Cexp)
    res = xp_ref[0, 1:H + 1, 1:W + 1, :].astype(f32)                           # (H, W, Cexp)
    o_ref[0] = jnp.maximum(y[:, 0:W, :] + res, 0.0).astype(o_ref.dtype)


# --------------------------------------------------------------------------- wrapper
def _fold_bn(gamma, beta, mean, var, eps=1e-5):
    scale = gamma / jnp.sqrt(var + eps)
    return scale, beta - mean * scale


def pruned_bottleneck_forward_nhwc(x_nhwc, params, stride=1, compute_dtype=jnp.bfloat16):
    """Fused forward of PrunedBottleneck (downsample=None), NHWC in / NHWC out."""
    assert stride == 1, "downsample=None requires stride == 1"
    N, H, W, Cin = x_nhwc.shape
    w1, w2, w3 = params["w1"], params["w2"], params["w3"]
    Cp = w1.shape[0]            # pruned_channel_plane
    Cexp = w3.shape[0]          # planes * 4
    assert Cin == Cexp, "downsample=None requires identity residual (Cin == 4*planes)"

    R, P = H + 2, W + 2
    srows = R * P + P           # farthest conv2 tap reads 2 rows past R*P; keep P zero rows

    s1, b1 = _fold_bn(*params["bn1"])
    s2, b2 = _fold_bn(*params["bn2"])
    s3, b3 = _fold_bn(*params["bn3"])
    s1 = s1.reshape(1, Cp).astype(jnp.float32);   b1 = b1.reshape(1, Cp).astype(jnp.float32)
    s2 = s2.reshape(1, Cp).astype(jnp.float32);   b2 = b2.reshape(1, Cp).astype(jnp.float32)
    s3 = s3.reshape(1, Cexp).astype(jnp.float32); b3 = b3.reshape(1, Cexp).astype(jnp.float32)

    # Weights as matmul operands in the MXU compute dtype.
    w1_2d = w1.reshape(Cp, Cin).T.astype(compute_dtype)                    # (Cin, Cp)
    w2_t = jnp.transpose(w2, (2, 3, 1, 0)).reshape(9, Cp, Cp).astype(compute_dtype)
    w3_2d = w3.reshape(Cexp, Cp).T.astype(compute_dtype)                   # (Cp, Cexp)

    # Spatially zero-padded input (also carries the residual); cast once to compute dtype.
    xp = jnp.pad(x_nhwc.astype(compute_dtype), ((0, 0), (1, 1), (1, 1), (0, 0)))

    # Interior mask (flat [R*P, 1]) so conv2 sees true zero padding after bn1+relu.
    hh = jnp.arange(R)[:, None]
    ww = jnp.arange(P)[None, :]
    mask = (((hh >= 1) & (hh <= H)) & ((ww >= 1) & (ww <= W))
            ).astype(jnp.float32).reshape(R * P, 1)

    # Generation-aware VMEM budget.
    bpe = jnp.dtype(compute_dtype).itemsize
    est = (2 * R * P * Cin * bpe                      # double-buffered input block
           + 2 * H * W * Cexp * 4                     # double-buffered f32 output block
           + srows * Cp * bpe                         # out1 scratch
           + 2 * (Cin * Cp + 9 * Cp * Cp + Cp * Cexp) * bpe
           + 4 * R * P * 4)                           # mask / BN vectors (approx)
    try:
        cap = int(pltpu.get_tpu_info().vmem_capacity_bytes)
    except Exception:
        cap = 64 * 1024 * 1024                        # conservative: v7x physical VMEM
    vmem_limit = min(int(cap * 0.9), max(4 * est, 32 * 1024 * 1024))

    kernel = functools.partial(_bottleneck_kernel, H, W, Cp, Cexp)

    return pl.pallas_call(
        kernel,
        out_shape=jax.ShapeDtypeStruct((N, H, W, Cexp), x_nhwc.dtype),
        grid=(N,),
        in_specs=[
            pl.BlockSpec((1, R, P, Cin), lambda n: (n, 0, 0, 0)),   # padded image tile
            pl.BlockSpec((R * P, 1), lambda n: (0, 0)),             # interior mask (resident)
            pl.BlockSpec((Cin, Cp), lambda n: (0, 0)),              # w1
            pl.BlockSpec((9, Cp, Cp), lambda n: (0, 0, 0)),         # w2 taps
            pl.BlockSpec((Cp, Cexp), lambda n: (0, 0)),             # w3
            pl.BlockSpec((1, Cp), lambda n: (0, 0)),                # bn1 scale
            pl.BlockSpec((1, Cp), lambda n: (0, 0)),                # bn1 bias
            pl.BlockSpec((1, Cp), lambda n: (0, 0)),                # bn2 scale
            pl.BlockSpec((1, Cp), lambda n: (0, 0)),                # bn2 bias
            pl.BlockSpec((1, Cexp), lambda n: (0, 0)),              # bn3 scale
            pl.BlockSpec((1, Cexp), lambda n: (0, 0)),              # bn3 bias
        ],
        out_specs=pl.BlockSpec((1, H, W, Cexp), lambda n: (n, 0, 0, 0)),
        scratch_shapes=[pltpu.VMEM((srows, Cp), compute_dtype)],
        compiler_params=pltpu.CompilerParams(
            dimension_semantics=("parallel",),
            vmem_limit_bytes=vmem_limit),
    )(xp, mask, w1_2d, w2_t, w3_2d, s1, b1, s2, b2, s3, b3)


def pruned_bottleneck_forward(x_nchw, params, stride=1, compute_dtype=jnp.bfloat16):
    """PyTorch-layout (NCHW) convenience wrapper.

    NOTE: prefer pruned_bottleneck_forward_nhwc in a real pipeline — the two transposes
    here are extra XLA HBM round trips kept only for parity with the PyTorch interface.
    """
    x_nhwc = jnp.transpose(x_nchw, (0, 2, 3, 1))
    out = pruned_bottleneck_forward_nhwc(x_nhwc, params, stride=stride,
                                         compute_dtype=compute_dtype)
    return jnp.transpose(out, (0, 3, 1, 2))


# --------------------------------------------------------------------------- reference
def _ref_forward(x, params, stride=1):
    def conv(x, w, s, pad):
        return lax.conv_general_dilated(
            x, w, (s, s), [(pad, pad), (pad, pad)],
            dimension_numbers=("NCHW", "OIHW", "NCHW"))

    def bn(x, p):
        g, b, m, v = p
        sc = g / jnp.sqrt(v + 1e-5)
        return x * sc[None, :, None, None] + (b - m * sc)[None, :, None, None]

    out = jax.nn.relu(bn(conv(x, params["w1"], 1, 0), params["bn1"]))
    out = jax.nn.relu(bn(conv(out, params["w2"], stride, 1), params["bn2"]))
    out = bn(conv(out, params["w3"], 1, 0), params["bn3"])
    return jax.nn.relu(out + x)


# --------------------------------------------------------------------------- main
if __name__ == "__main__":
    planes = 8
    pruning_rate = 0.5
    inplanes = planes * 4                                       # 32 => downsample=None valid
    pruned = int(planes - math.floor(planes * pruning_rate))    # 4
    stride = 1
    Nb, H, W = 2, 8, 8

    key = jax.random.PRNGKey(0)
    ks = jax.random.split(key, 8)

    def bn_params(k, c):
        k1, k2, k3, k4 = jax.random.split(k, 4)
        return (jax.random.uniform(k1, (c,), jnp.float32, 0.5, 1.5),
                jax.random.normal(k2, (c,), jnp.float32) * 0.1,
                jax.random.normal(k3, (c,), jnp.float32) * 0.1,
                jax.random.uniform(k4, (c,), jnp.float32, 0.5, 1.5))

    params = {
        "w1": jax.random.normal(ks[0], (pruned, inplanes, 1, 1), jnp.float32) * 0.1,
        "w2": jax.random.normal(ks[1], (pruned, pruned, 3, 3), jnp.float32) * 0.1,
        "w3": jax.random.normal(ks[2], (planes * 4, pruned, 1, 1), jnp.float32) * 0.1,
        "bn1": bn_params(ks[3], pruned),
        "bn2": bn_params(ks[4], pruned),
        "bn3": bn_params(ks[5], planes * 4),
    }
    x = jax.random.normal(ks[6], (Nb, inplanes, H, W), jnp.float32)

    ref = jax.block_until_ready(_ref_forward(x, params, stride=stride))

    # f32 compute path: tight numerical check against the XLA reference.
    out_f32 = jax.block_until_ready(
        pruned_bottleneck_forward(x, params, stride=stride, compute_dtype=jnp.float32))
    assert out_f32.shape == ref.shape == (Nb, planes * 4, H, W)
    err32 = float(jnp.max(jnp.abs(out_f32 - ref)))
    assert jnp.allclose(out_f32, ref, rtol=1e-4, atol=1e-4), err32

    # bf16 MXU path (default performance configuration): looser tolerance.
    out_bf16 = jax.block_until_ready(
        pruned_bottleneck_forward(x, params, stride=stride, compute_dtype=jnp.bfloat16))
    errbf = float(jnp.max(jnp.abs(out_bf16 - ref)))
    assert jnp.allclose(out_bf16, ref, rtol=5e-2, atol=5e-2), errbf

    print("KERNEL_OK")
</pallas_src>

<mosaic_0001>
module attributes {stable_mosaic.version = 11 : i64} {
  func.func @_bottleneck_kernel(%arg0: i32, %arg1: memref<1x10x10x32xf32, #tpu.memory_space<vmem>>, %arg2: memref<100x1xf32, #tpu.memory_space<vmem>>, %arg3: memref<32x4xf32, #tpu.memory_space<vmem>>, %arg4: memref<9x4x4xf32, #tpu.memory_space<vmem>>, %arg5: memref<4x32xf32, #tpu.memory_space<vmem>>, %arg6: memref<1x4xf32, #tpu.memory_space<vmem>>, %arg7: memref<1x4xf32, #tpu.memory_space<vmem>>, %arg8: memref<1x4xf32, #tpu.memory_space<vmem>>, %arg9: memref<1x4xf32, #tpu.memory_space<vmem>>, %arg10: memref<1x32xf32, #tpu.memory_space<vmem>>, %arg11: memref<1x32xf32, #tpu.memory_space<vmem>>, %arg12: memref<1x8x8x32xf32, #tpu.memory_space<vmem>>, %arg13: memref<110x4xf32, #tpu.memory_space<vmem>>) attributes {dimension_semantics = [#tpu.dimension_semantics<parallel>], iteration_bounds = array<i64: 2>, scalar_prefetch = 0 : i64, scratch_operands = 1 : i64, tpu.core_type = #tpu.core_type<tc>, window_params = [{transform_indices = @transform_0, window_bounds = array<i64: 1, 10, 10, 32>}, {pipeline_mode = #tpu.pipeline_mode<synchronous>, transform_indices = @transform_1, window_bounds = array<i64: 100, 1>}, {pipeline_mode = #tpu.pipeline_mode<synchronous>, transform_indices = @transform_2, window_bounds = array<i64: 32, 4>}, {pipeline_mode = #tpu.pipeline_mode<synchronous>, transform_indices = @transform_3, window_bounds = array<i64: 9, 4, 4>}, {pipeline_mode = #tpu.pipeline_mode<synchronous>, transform_indices = @transform_4, window_bounds = array<i64: 4, 32>}, {pipeline_mode = #tpu.pipeline_mode<synchronous>, transform_indices = @transform_5, window_bounds = array<i64: 1, 4>}, {pipeline_mode = #tpu.pipeline_mode<synchronous>, transform_indices = @transform_6, window_bounds = array<i64: 1, 4>}, {pipeline_mode = #tpu.pipeline_mode<synchronous>, transform_indices = @transform_7, window_bounds = array<i64: 1, 4>}, {pipeline_mode = #tpu.pipeline_mode<synchronous>, transform_indices = @transform_8, window_bounds = array<i64: 1, 4>}, {pipeline_mode = #tpu.pipeline_mode<synchronous>, transform_indices = @transform_9, window_bounds = array<i64: 1, 32>}, {pipeline_mode = #tpu.pipeline_mode<synchronous>, transform_indices = @transform_10, window_bounds = array<i64: 1, 32>}, {transform_indices = @transform_11, window_bounds = array<i64: 1, 8, 8, 32>}]} {
    %c0 = arith.constant 0 : index
    %c0_0 = arith.constant 0 : index
    %c0_1 = arith.constant 0 : index
    %c0_2 = arith.constant 0 : index
    %0 = vector.load %arg1[%c0, %c0_0, %c0_1, %c0_2] : memref<1x10x10x32xf32, #tpu.memory_space<vmem>>, vector<1x10x10x32xf32>
    %1 = vector.shape_cast %0 : vector<1x10x10x32xf32> to vector<10x10x32xf32>
    %2 = vector.shape_cast %1 : vector<10x10x32xf32> to vector<100x32xf32>
    %c0_3 = arith.constant 0 : index
    %c0_4 = arith.constant 0 : index
    %3 = vector.load %arg3[%c0_3, %c0_4] : memref<32x4xf32, #tpu.memory_space<vmem>>, vector<32x4xf32>
    %cst = arith.constant dense<0.000000e+00> : vector<100x4xf32>
    %4 = tpu.matmul %2, %3, %cst {dimension_numbers = #tpu.dot_dimension_numbers<[1], [0], [0], [1], [0, 0, 1, 1], [], []>} : vector<100x32xf32>, vector<32x4xf32>, vector<100x4xf32> -> vector<100x4xf32>
    %c0_5 = arith.constant 0 : index
    %c0_6 = arith.constant 0 : index
    %5 = vector.load %arg6[%c0_5, %c0_6] : memref<1x4xf32, #tpu.memory_space<vmem>>, vector<1x4xf32>
    %6 = vector.broadcast %5 : vector<1x4xf32> to vector<100x4xf32>
    %7 = arith.mulf %4, %6 : vector<100x4xf32>
    %c0_7 = arith.constant 0 : index
    %c0_8 = arith.constant 0 : index
    %8 = vector.load %arg7[%c0_7, %c0_8] : memref<1x4xf32, #tpu.memory_space<vmem>>, vector<1x4xf32>
    %9 = vector.broadcast %8 : vector<1x4xf32> to vector<100x4xf32>
    %10 = arith.addf %7, %9 : vector<100x4xf32>
    %cst_9 = arith.constant 0.000000e+00 : f32
    %11 = vector.broadcast %cst_9 : f32 to vector<100x4xf32>
    %12 = arith.maximumf %10, %11 : vector<100x4xf32>
    %c0_10 = arith.constant 0 : index
    %c0_11 = arith.constant 0 : index
    %13 = vector.load %arg2[%c0_10, %c0_11] : memref<100x1xf32, #tpu.memory_space<vmem>>, vector<100x1xf32>
    %14 = vector.broadcast %13 : vector<100x1xf32> to vector<100x4xf32>
    %15 = arith.mulf %12, %14 : vector<100x4xf32>
    %c0_12 = arith.constant 0 : index
    %c0_13 = arith.constant 0 : index
    %16 = vector.load %arg13[%c0_12, %c0_13] : memref<110x4xf32, #tpu.memory_space<vmem>>, vector<100x4xf32>
    tpu.vector_store %arg13[%c0_12, %c0_13], %15 {strides = array<i32>} : memref<110x4xf32, #tpu.memory_space<vmem>>, vector<100x4xf32>,
    %cst_14 = arith.constant 0.000000e+00 : f32
    %17 = vector.broadcast %cst_14 : f32 to vector<10x4xf32>
    %c100 = arith.constant 100 : index
    %c0_15 = arith.constant 0 : index
    %18 = vector.load %arg13[%c100, %c0_15] : memref<110x4xf32, #tpu.memory_space<vmem>>, vector<10x4xf32>
    tpu.vector_store %arg13[%c100, %c0_15], %17 {strides = array<i32>} : memref<110x4xf32, #tpu.memory_space<vmem>>, vector<10x4xf32>,
    %cst_16 = arith.constant 0.000000e+00 : f32
    %19 = vector.broadcast %cst_16 : f32 to vector<80x4xf32>
    %c0_17 = arith.constant 0 : index
    %c0_18 = arith.constant 0 : index
    %20 = vector.load %arg13[%c0_17, %c0_18] : memref<110x4xf32, #tpu.memory_space<vmem>>, vector<80x4xf32>
    %c0_19 = arith.constant 0 : index
    %c0_20 = arith.constant 0 : index
    %c0_21 = arith.constant 0 : index
    %21 = vector.load %arg4[%c0_19, %c0_20, %c0_21] : memref<9x4x4xf32, #tpu.memory_space<vmem>>, vector<1x4x4xf32>
    %22 = vector.shape_cast %21 : vector<1x4x4xf32> to vector<4x4xf32>
    %cst_22 = arith.constant dense<0.000000e+00> : vector<80x4xf32>
    %23 = tpu.matmul %20, %22, %cst_22 {dimension_numbers = #tpu.dot_dimension_numbers<[1], [0], [0], [1], [0, 0, 1, 1], [], []>} : vector<80x4xf32>, vector<4x4xf32>, vector<80x4xf32> -> vector<80x4xf32>
    %24 = arith.addf %19, %23 : vector<80x4xf32>
    %c1 = arith.constant 1 : index
    %c0_23 = arith.constant 0 : index
    %25 = vector.load %arg13[%c1, %c0_23] : memref<110x4xf32, #tpu.memory_space<vmem>>, vector<80x4xf32>
    %c1_24 = arith.constant 1 : index
    %c0_25 = arith.constant 0 : index
    %c0_26 = arith.constant 0 : index
    %26 = vector.load %arg4[%c1_24, %c0_25, %c0_26] : memref<9x4x4xf32, #tpu.memory_space<vmem>>, vector<1x4x4xf32>
    %27 = vector.shape_cast %26 : vector<1x4x4xf32> to vector<4x4xf32>
    %cst_27 = arith.constant dense<0.000000e+00> : vector<80x4xf32>
    %28 = tpu.matmul %25, %27, %cst_27 {dimension_numbers = #tpu.dot_dimension_numbers<[1], [0], [0], [1], [0, 0, 1, 1], [], []>} : vector<80x4xf32>, vector<4x4xf32>, vector<80x4xf32> -> vector<80x4xf32>
    %29 = arith.addf %24, %28 : vector<80x4xf32>
    %c2 = arith.constant 2 : index
    %c0_28 = arith.constant 0 : index
    %30 = vector.load %arg13[%c2, %c0_28] : memref<110x4xf32, #tpu.memory_space<vmem>>, vector<80x4xf32>
    %c2_29 = arith.constant 2 : index
    %c0_30 = arith.constant 0 : index
    %c0_31 = arith.constant 0 : index
    %31 = vector.load %arg4[%c2_29, %c0_30, %c0_31] : memref<9x4x4xf32, #tpu.memory_space<vmem>>, vector<1x4x4xf32>
    %32 = vector.shape_cast %31 : vector<1x4x4xf32> to vector<4x4xf32>
    %cst_32 = arith.constant dense<0.000000e+00> : vector<80x4xf32>
    %33 = tpu.matmul %30, %32, %cst_32 {dimension_numbers = #tpu.dot_dimension_numbers<[1], [0], [0], [1], [0, 0, 1, 1], [], []>} : vector<80x4xf32>, vector<4x4xf32>, vector<80x4xf32> -> vector<80x4xf32>
    %34 = arith.addf %29, %33 : vector<80x4xf32>
    %c10 = arith.constant 10 : index
    %c0_33 = arith.constant 0 : index
    %35 = vector.load %arg13[%c10, %c0_33] : memref<110x4xf32, #tpu.memory_space<vmem>>, vector<80x4xf32>
    %c3 = arith.constant 3 : index
    %c0_34 = arith.constant 0 : index
    %c0_35 = arith.constant 0 : index
    %36 = vector.load %arg4[%c3, %c0_34, %c0_35] : memref<9x4x4xf32, #tpu.memory_space<vmem>>, vector<1x4x4xf32>
    %37 = vector.shape_cast %36 : vector<1x4x4xf32> to vector<4x4xf32>
    %cst_36 = arith.constant dense<0.000000e+00> : vector<80x4xf32>
    %38 = tpu.matmul %35, %37, %cst_36 {dimension_numbers = #tpu.dot_dimension_numbers<[1], [0], [0], [1], [0, 0, 1, 1], [], []>} : vector<80x4xf32>, vector<4x4xf32>, vector<80x4xf32> -> vector<80x4xf32>
    %39 = arith.addf %34, %38 : vector<80x4xf32>
    %c11 = arith.constant 11 : index
    %c0_37 = arith.constant 0 : index
    %40 = vector.load %arg13[%c11, %c0_37] : memref<110x4xf32, #tpu.memory_space<vmem>>, vector<80x4xf32>
    %c4 = arith.constant 4 : index
    %c0_38 = arith.constant 0 : index
    %c0_39 = arith.constant 0 : index
    %41 = vector.load %arg4[%c4, %c0_38, %c0_39] : memref<9x4x4xf32, #tpu.memory_space<vmem>>, vector<1x4x4xf32>
    %42 = vector.shape_cast %41 : vector<1x4x4xf32> to vector<4x4xf32>
    %cst_40 = arith.constant dense<0.000000e+00> : vector<80x4xf32>
    %43 = tpu.matmul %40, %42, %cst_40 {dimension_numbers = #tpu.dot_dimension_numbers<[1], [0], [0], [1], [0, 0, 1, 1], [], []>} : vector<80x4xf32>, vector<4x4xf32>, vector<80x4xf32> -> vector<80x4xf32>
    %44 = arith.addf %39, %43 : vector<80x4xf32>
    %c12 = arith.constant 12 : index
    %c0_41 = arith.constant 0 : index
    %45 = vector.load %arg13[%c12, %c0_41] : memref<110x4xf32, #tpu.memory_space<vmem>>, vector<80x4xf32>
    %c5 = arith.constant 5 : index
    %c0_42 = arith.constant 0 : index
    %c0_43 = arith.constant 0 : index
    %46 = vector.load %arg4[%c5, %c0_42, %c0_43] : memref<9x4x4xf32, #tpu.memory_space<vmem>>, vector<1x4x4xf32>
    %47 = vector.shape_cast %46 : vector<1x4x4xf32> to vector<4x4xf32>
    %cst_44 = arith.constant dense<0.000000e+00> : vector<80x4xf32>
    %48 = tpu.matmul %45, %47, %cst_44 {dimension_numbers = #tpu.dot_dimension_numbers<[1], [0], [0], [1], [0, 0, 1, 1], [], []>} : vector<80x4xf32>, vector<4x4xf32>, vector<80x4xf32> -> vector<80x4xf32>
    %49 = arith.addf %44, %48 : vector<80x4xf32>
    %c20 = arith.constant 20 : index
    %c0_45 = arith.constant 0 : index
    %50 = vector.load %arg13[%c20, %c0_45] : memref<110x4xf32, #tpu.memory_space<vmem>>, vector<80x4xf32>
    %c6 = arith.constant 6 : index
    %c0_46 = arith.constant 0 : index
    %c0_47 = arith.constant 0 : index
    %51 = vector.load %arg4[%c6, %c0_46, %c0_47] : memref<9x4x4xf32, #tpu.memory_space<vmem>>, vector<1x4x4xf32>
    %52 = vector.shape_cast %51 : vector<1x4x4xf32> to vector<4x4xf32>
    %cst_48 = arith.constant dense<0.000000e+00> : vector<80x4xf32>
    %53 = tpu.matmul %50, %52, %cst_48 {dimension_numbers = #tpu.dot_dimension_numbers<[1], [0], [0], [1], [0, 0, 1, 1], [], []>} : vector<80x4xf32>, vector<4x4xf32>, vector<80x4xf32> -> vector<80x4xf32>
    %54 = arith.addf %49, %53 : vector<80x4xf32>
    %c21 = arith.constant 21 : index
    %c0_49 = arith.constant 0 : index
    %55 = vector.load %arg13[%c21, %c0_49] : memref<110x4xf32, #tpu.memory_space<vmem>>, vector<80x4xf32>
    %c7 = arith.constant 7 : index
    %c0_50 = arith.constant 0 : index
    %c0_51 = arith.constant 0 : index
    %56 = vector.load %arg4[%c7, %c0_50, %c0_51] : memref<9x4x4xf32, #tpu.memory_space<vmem>>, vector<1x4x4xf32>
    %57 = vector.shape_cast %56 : vector<1x4x4xf32> to vector<4x4xf32>
    %cst_52 = arith.constant dense<0.000000e+00> : vector<80x4xf32>
    %58 = tpu.matmul %55, %57, %cst_52 {dimension_numbers = #tpu.dot_dimension_numbers<[1], [0], [0], [1], [0, 0, 1, 1], [], []>} : vector<80x4xf32>, vector<4x4xf32>, vector<80x4xf32> -> vector<80x4xf32>
    %59 = arith.addf %54, %58 : vector<80x4xf32>
    %c22 = arith.constant 22 : index
    %c0_53 = arith.constant 0 : index
    %60 = vector.load %arg13[%c22, %c0_53] : memref<110x4xf32, #tpu.memory_space<vmem>>, vector<80x4xf32>
    %c8 = arith.constant 8 : index
    %c0_54 = arith.constant 0 : index
    %c0_55 = arith.constant 0 : index
    %61 = vector.load %arg4[%c8, %c0_54, %c0_55] : memref<9x4x4xf32, #tpu.memory_space<vmem>>, vector<1x4x4xf32>
    %62 = vector.shape_cast %61 : vector<1x4x4xf32> to vector<4x4xf32>
    %cst_56 = arith.constant dense<0.000000e+00> : vector<80x4xf32>
    %63 = tpu.matmul %60, %62, %cst_56 {dimension_numbers = #tpu.dot_dimension_numbers<[1], [0], [0], [1], [0, 0, 1, 1], [], []>} : vector<80x4xf32>, vector<4x4xf32>, vector<80x4xf32> -> vector<80x4xf32>
    %64 = arith.addf %59, %63 : vector<80x4xf32>
    %c0_57 = arith.constant 0 : index
    %c0_58 = arith.constant 0 : index
    %65 = vector.load %arg8[%c0_57, %c0_58] : memref<1x4xf32, #tpu.memory_space<vmem>>, vector<1x4xf32>
    %66 = vector.broadcast %65 : vector<1x4xf32> to vector<80x4xf32>
    %67 = arith.mulf %64, %66 : vector<80x4xf32>
    %c0_59 = arith.constant 0 : index
    %c0_60 = arith.constant 0 : index
    %68 = vector.load %arg9[%c0_59, %c0_60] : memref<1x4xf32, #tpu.memory_space<vmem>>, vector<1x4xf32>
    %69 = vector.broadcast %68 : vector<1x4xf32> to vector<80x4xf32>
    %70 = arith.addf %67, %69 : vector<80x4xf32>
    %cst_61 = arith.constant 0.000000e+00 : f32
    %71 = vector.broadcast %cst_61 : f32 to vector<80x4xf32>
    %72 = arith.maximumf %70, %71 : vector<80x4xf32>
    %c0_62 = arith.constant 0 : index
    %c0_63 = arith.constant 0 : index
    %73 = vector.load %arg5[%c0_62, %c0_63] : memref<4x32xf32, #tpu.memory_space<vmem>>, vector<4x32xf32>
    %cst_64 = arith.constant dense<0.000000e+00> : vector<80x32xf32>
    %74 = tpu.matmul %72, %73, %cst_64 {dimension_numbers = #tpu.dot_dimension_numbers<[1], [0], [0], [1], [0, 0, 1, 1], [], []>} : vector<80x4xf32>, vector<4x32xf32>, vector<80x32xf32> -> vector<80x32xf32>
    %c0_65 = arith.constant 0 : index
    %c0_66 = arith.constant 0 : index
    %75 = vector.load %arg10[%c0_65, %c0_66] : memref<1x32xf32, #tpu.memory_space<vmem>>, vector<1x32xf32>
    %76 = vector.broadcast %75 : vector<1x32xf32> to vector<80x32xf32>
    %77 = arith.mulf %74, %76 : vector<80x32xf32>
    %c0_67 = arith.constant 0 : index
    %c0_68 = arith.constant 0 : index
    %78 = vector.load %arg11[%c0_67, %c0_68] : memref<1x32xf32, #tpu.memory_space<vmem>>, vector<1x32xf32>
    %79 = vector.broadcast %78 : vector<1x32xf32> to vector<80x32xf32>
    %80 = arith.addf %77, %79 : vector<80x32xf32>
    %81 = vector.shape_cast %80 : vector<80x32xf32> to vector<8x10x32xf32>
    %c0_69 = arith.constant 0 : index
    %c1_70 = arith.constant 1 : index
    %c1_71 = arith.constant 1 : index
    %c0_72 = arith.constant 0 : index
    %82 = vector.load %arg1[%c0_69, %c1_70, %c1_71, %c0_72] : memref<1x10x10x32xf32, #tpu.memory_space<vmem>>, vector<1x8x8x32xf32>
    %83 = vector.shape_cast %82 : vector<1x8x8x32xf32> to vector<8x8x32xf32>
    %84 = vector.extract_strided_slice %81 {offsets = [0, 0, 0], sizes = [8, 8, 32], strides = [1, 1, 1]} : vector<8x10x32xf32> to vector<8x8x32xf32>
    %85 = arith.addf %84, %83 : vector<8x8x32xf32>
    %cst_73 = arith.constant 0.000000e+00 : f32
    %86 = vector.broadcast %cst_73 : f32 to vector<8x8x32xf32>
    %87 = arith.maximumf %85, %86 : vector<8x8x32xf32>
    %c0_74 = arith.constant 0 : index
    %c0_75 = arith.constant 0 : index
    %c0_76 = arith.constant 0 : index
    %c0_77 = arith.constant 0 : index
    %88 = vector.load %arg12[%c0_74, %c0_75, %c0_76, %c0_77] : memref<1x8x8x32xf32, #tpu.memory_space<vmem>>, vector<1x8x8x32xf32>
    %89 = vector.shape_cast %88 : vector<1x8x8x32xf32> to vector<8x8x32xf32>
    %90 = vector.shape_cast %87 : vector<8x8x32xf32> to vector<1x8x8x32xf32>
    tpu.vector_store %arg12[%c0_74, %c0_75, %c0_76, %c0_77], %90 {strides = array<i32>} : memref<1x8x8x32xf32, #tpu.memory_space<vmem>>, vector<1x8x8x32xf32>,
    return
  }
  func.func @transform_0(%arg0: i32) -> (i32, i32, i32, i32) {
    %c0_i32 = arith.constant 0 : i32
    %c0_i32_0 = arith.constant 0 : i32
    %c0_i32_1 = arith.constant 0 : i32
    %c0_i32_2 = arith.constant 0 : i32
    return %arg0, %c0_i32, %c0_i32_0, %c0_i32_1 : i32, i32, i32, i32
  }
  func.func @transform_1(%arg0: i32) -> (i32, i32) {
    %c0_i32 = arith.constant 0 : i32
    %c0_i32_0 = arith.constant 0 : i32
    %c0_i32_1 = arith.constant 0 : i32
    return %c0_i32, %c0_i32_0 : i32, i32
  }
  func.func @transform_2(%arg0: i32) -> (i32, i32) {
    %c0_i32 = arith.constant 0 : i32
    %c0_i32_0 = arith.constant 0 : i32
    %c0_i32_1 = arith.constant 0 : i32
    return %c0_i32, %c0_i32_0 : i32, i32
  }
  func.func @transform_3(%arg0: i32) -> (i32, i32, i32) {
    %c0_i32 = arith.constant 0 : i32
    %c0_i32_0 = arith.constant 0 : i32
    %c0_i32_1 = arith.constant 0 : i32
    %c0_i32_2 = arith.constant 0 : i32
    return %c0_i32, %c0_i32_0, %c0_i32_1 : i32, i32, i32
  }
  func.func @transform_4(%arg0: i32) -> (i32, i32) {
    %c0_i32 = arith.constant 0 : i32
    %c0_i32_0 = arith.constant 0 : i32
    %c0_i32_1 = arith.constant 0 : i32
    return %c0_i32, %c0_i32_0 : i32, i32
  }
  func.func @transform_5(%arg0: i32) -> (i32, i32) {
    %c0_i32 = arith.constant 0 : i32
    %c0_i32_0 = arith.constant 0 : i32
    %c0_i32_1 = arith.constant 0 : i32
    return %c0_i32, %c0_i32_0 : i32, i32
  }
  func.func @transform_6(%arg0: i32) -> (i32, i32) {
    %c0_i32 = arith.constant 0 : i32
    %c0_i32_0 = arith.constant 0 : i32
    %c0_i32_1 = arith.constant 0 : i32
    return %c0_i32, %c0_i32_0 : i32, i32
  }
  func.func @transform_7(%arg0: i32) -> (i32, i32) {
    %c0_i32 = arith.constant 0 : i32
    %c0_i32_0 = arith.constant 0 : i32
    %c0_i32_1 = arith.constant 0 : i32
    return %c0_i32, %c0_i32_0 : i32, i32
  }
  func.func @transform_8(%arg0: i32) -> (i32, i32) {
    %c0_i32 = arith.constant 0 : i32
    %c0_i32_0 = arith.constant 0 : i32
    %c0_i32_1 = arith.constant 0 : i32
    return %c0_i32, %c0_i32_0 : i32, i32
  }
  func.func @transform_9(%arg0: i32) -> (i32, i32) {
    %c0_i32 = arith.constant 0 : i32
    %c0_i32_0 = arith.constant 0 : i32
    %c0_i32_1 = arith.constant 0 : i32
    return %c0_i32, %c0_i32_0 : i32, i32
  }
  func.func @transform_10(%arg0: i32) -> (i32, i32) {
    %c0_i32 = arith.constant 0 : i32
    %c0_i32_0 = arith.constant 0 : i32
    %c0_i32_1 = arith.constant 0 : i32
    return %c0_i32, %c0_i32_0 : i32, i32
  }
  func.func @transform_11(%arg0: i32) -> (i32, i32, i32, i32) {
    %c0_i32 = arith.constant 0 : i32
    %c0_i32_0 = arith.constant 0 : i32
    %c0_i32_1 = arith.constant 0 : i32
    %c0_i32_2 = arith.constant 0 : i32
    return %arg0, %c0_i32, %c0_i32_0, %c0_i32_1 : i32, i32, i32, i32
  }
}

</mosaic_0001>

<bundles_post_ra>
// kernel: tpu_custom_call.1
= control target key start
LH: loop header
LB: loop body
LE: loop exit
PB: predicated region body
PF: predicated region fallthrough
CT: control target
= control target key end

     0   :  { %16 = vsyncpa [#allocation4], 0  ;;  %s3102_s0 = inlined_call_operand.vmem [shape: f32[2,10,10,32], index: 0, kind: input, shape index: {}]   ;;  %s3103_s1 = inlined_call_operand.vmem [shape: f32[100,1], index: 1, kind: input, shape index: {}]   ;;  %s3104_s2 = inlined_call_operand.vmem [shape: f32[32,4], index: 2, kind: input, shape index: {}]   ;;  %s3105_s3 = inlined_call_operand.vmem [shape: f32[9,4,4], index: 3, kind: input, shape index: {}]   ;;  %s3106_s4 = inlined_call_operand.vmem [shape: f32[4,32], index: 4, kind: input, shape index: {}]   ;;  %s3107_s5 = inlined_call_operand.vmem [shape: f32[1,4], index: 5, kind: input, shape index: {}]   ;;  %s3108_s6 = inlined_call_operand.vmem [shape: f32[1,4], index: 6, kind: input, shape index: {}]   ;;  %s3109_s7 = inlined_call_operand.vmem [shape: f32[1,4], index: 7, kind: input, shape index: {}]   ;;  %s3110_s8 = inlined_call_operand.vmem [shape: f32[1,4], index: 8, kind: input, shape index: {}]   ;;  %s3111_s9 = inlined_call_operand.vmem [shape: f32[1,32], index: 9, kind: input, shape index: {}]   ;;  %s3112_s10 = inlined_call_operand.vmem [shape: f32[1,32], index: 10, kind: input, shape index: {}]   ;;  %s3113_s11 = inlined_call_operand.hbm [shape: f32[2,8,8,32], index: 11, kind: output, shape index: {}]  }
   0x1   :  { %18 = vsyncpa [#allocation4 + $0x1], 0  ;;  %s2508_s17 = smov 0   ;;  %s2510_s18 = smov 0  }
   0x2   :  { %s2512_s19 = smov 0   ;;  %s2514_s20 = smov 0  }
   0x3 LB: > { %s2529_s21 = sadd.s32 4294967295, %s2442_s20   ;;  %s2173_s22 = sadd.s32 4294967294, %s2442_s20   ;;  %s2442_s20 = sphi %s2514_s20, %s3121_s20   ;;  %s2438_s19 = sphi %s2512_s19, %s3120_s19   ;;  %s2434_s18 = sphi %s2510_s18, %s3119_s18   ;;  %s2430_s17 = sphi %s2508_s17, %s3118_s17  }
   0x4   : > { %s2533_s23 = sadd.s32 1, %s2442_s20   ;;  %s267_s24 = sadd.s32 1, %s2438_s19 }
   0x5   : > { %s264_s25 = ssub.s32 %s2442_s20, %s2533_s23  ;;  %p277_p0 = scmp.ne.s32.totalorder %s2438_s19, %s2434_s18 }
   0x6   : > { %p265_p1 = scmp.eq.s32.totalorder %s264_s25, 0  ;;  %p278_p2 = scmp.eq.s32.totalorder %s2529_s21, 1 }
   0x7   : > { %p283_p3 = scmp.ne.s32.totalorder %s2434_s18, %s2430_s17  ;;  %p284_p4 = scmp.eq.s32.totalorder %s2173_s22, 1 }
   0x8   : > { %s2544_s26 = scalar_select %p265_p1, %s2438_s19, %s267_s24  }
   0x9   : > { %p2546_p5 = por %p278_p2, %p277_p0  ;;  %p2550_p6 = por %p284_p4, %p283_p3 }
   0xa   : > { %3114 = sst [smem:[#allocation6_spill]] %s2544_s26  ;;  %p2176_p7 = scmp.ge.s32.totalorder %s2442_s20, 1 }
   0xb   : > { %p340_p8 = scmp.lt.s32.totalorder %s2442_s20, 3 }
   0xd   : > { %p341_p9 = pnand %p2176_p7, %p340_p8 }
   0xe   : > { %p380_p10 = scmp.lt.s32.totalorder (!%p341_p9), %s2529_s21, 1  ;;  %s2400_s13 = scalar_lea.hbm (!%p341_p9), %s3113_s11, 128 }
   0xf   : > { %344 = sbr.rel (%p341_p9) target bundleno = 712 (0x2c8), region = 64 }
  0x14   : > { %v662_v0 = vld [vmem:[%s3103_s1 + $0x18] sm:$0xff]  ;;  %v660_v1 = vld [vmem:[%s3103_s1 + $0x8] sm:$0xff]  ;;  %v2444_v3 = vmov 0   ;;  %v457_v4 = vld [vmem:[%s3104_s2 + $0x10] sm:$0xff]  ;;  %s381_s24 = scalar_select %p380_p10, %s2529_s21, 1  ;;  %vm529_vm0 = vcmask 261120  }
  0x15   : > { %v458_v2 = vld [vmem:[%s3104_s2 + $0x18] sm:$0xff]  ;;  %2372 = vset.pattern.permute.xlu1 %v2444_v3  ;;  %2371 = vset.pattern.permute.xlu0 %v2444_v3  ;;  %v456_v5 = vld [vmem:[%s3104_s2 + $0x8] sm:$0xff]  ;;  %v455_v6 = vld [vmem:[%s3104_s2] sm:$0xff]  ;;  %vm821_vm1 = vcmask 1043456   ;;  %vm750_vm2 = vcmask 31744   ;;  %vm763_vm3 = vcmask 27648  }
  0x16   : > { %689 = vperm.xlu1 %2372, %v662_v0   ;;  %679 = vperm.xlu0 %2371, %v660_v1   ;;  %s2327_s30 = smul.u32 160, %s381_s24  ;;  %v663_v7 = vld [vmem:[%s3103_s1 + $0x20] sm:$0xff]  ;;  %v661_v8 = vld [vmem:[%s3103_s1 + $0x10] sm:$0xff]  ;;  %v666_v18 = vld [vmem:[%s3103_s1 + $0x38] sm:$0xff]  ;;  %s377_s24 = sand.u32 1, %s2434_s18  }
  0x17   : > { %568 = vmatpush.msra.mxu0 %v458_v2  ;;  %2373 = vset.pattern.permute.xlu2 %v2444_v3  ;;  %v667_v17 = vld [vmem:[%s3103_s1 + $0x40] sm:$0xff]  ;;  %v669_v26 = vld [vmem:[%s3103_s1 + $0x50] sm:$0xff]  ;;  %v664_v50 = vld [vmem:[%s3103_s1 + $0x28] sm:$0xff] }
  0x18   : > { %s2579_s26 = scalar_lea.vmem %s3102_s0, %s2327_s30  ;;  %v659_v29 = vld [vmem:[%s3103_s1] sm:$0xff]  ;;  %699 = vperm.xlu2 %2373, %v664_v50   ;;  %v665_v58 = vld [vmem:[%s3103_s1 + $0x30] sm:$0xff]  ;;  %v668_v1 = vld [vmem:[%s3103_s1 + $0x48] sm:$0xff]  ;;  %s2177_s30 = sshll.u32 %s377_s24, 6 }
  0x19   : > { %569 = vmatpush.msra.mxu0 %v457_v4  ;;  %v385_v9 = vld [vmem:[%s2579_s26] sm:$0xff]  ;;  %v386_v10 = vld [vmem:[%s2579_s26 + $0x8] sm:$0x3]  ;;  %v387_v11 = vld [vmem:[%s2579_s26 + $0x10] sm:$0xff]  ;;  %s3031_s12 = scalar_lea.vmem [#allocation3], %s2177_s30 }
  0x1a   : > { %v425_v12 = vrot.slane %v385_v9, 2  ;;  %v426_v13 = vrot.slane %v385_v9, 4  ;;  %v427_v14 = vrot.slane %v385_v9, 6  ;;  %459 = vst [vmem:[#allocation1] ss:$4 sm:$0xff] %v385_v9  ;;  %v428_v15 = vrot.slane %v387_v11, 2 }
  0x1b   : > { %570 = vmatpush.msra.mxu0 %v456_v5  ;;  %467 = vst [vmem:[#allocation1 + $0x20] ss:$4 sm:$0xff] %v386_v10  ;;  %v429_v16 = vrot.slane %v387_v11, 4  ;;  %v389_v19 = vld [vmem:[%s2579_s26 + $0x20] sm:$0xff]  ;;  %v430_v20 = vrot.slane %v387_v11, 6  ;;  %v391_v30 = vld [vmem:[%s2579_s26 + $0x30] sm:$0xff] }
  0x1c   : > { %461 = vst [vmem:[#allocation1 + $0x1] ss:$4 sm:$0xff] %v425_v12  ;;  %v388_v21 = vld [vmem:[%s2579_s26 + $0x18] sm:$0x3]  ;;  %v431_v23 = vrot.slane %v389_v19, 2  ;;  %v432_v24 = vrot.slane %v389_v19, 4 }
  0x1d   : > { %571 = vmatpush.msra.mxu0 %v455_v6  ;;  %463 = vst [vmem:[#allocation1 + $0x2] ss:$4 sm:$0xff] %v426_v13  ;;  %v433_v25 = vrot.slane %v389_v19, 6  ;;  %v390_v27 = vld [vmem:[%s2579_s26 + $0x28] sm:$0x3]  ;;  %v434_v31 = vrot.slane %v391_v30, 2 }
  0x1e   : > { %694 = vperm.xlu1 %2372, %v663_v7   ;;  %684 = vperm.xlu0 %2371, %v661_v8   ;;  %465 = vst [vmem:[#allocation1 + $0x3] ss:$4 sm:$0xff] %v427_v14  ;;  %v435_v32 = vrot.slane %v391_v30, 4  ;;  %v436_v33 = vrot.slane %v391_v30, 6  ;;  %v393_v34 = vld [vmem:[%s2579_s26 + $0x40] sm:$0xff]  ;;  %v395_v42 = vld [vmem:[%s2579_s26 + $0x50] sm:$0xff] }
  0x1f   : > { %469 = vst [vmem:[#allocation1 + $0x21] ss:$4 sm:$0xff] %v387_v11  ;;  %v671_v36 = vld [vmem:[%s3103_s1 + $0x60] sm:$0xf]  ;;  %v392_v37 = vld [vmem:[%s2579_s26 + $0x38] sm:$0x3] }
  0x20   : > { %471 = vst [vmem:[#allocation1 + $0x22] ss:$4 sm:$0xff] %v428_v15  ;;  %v437_v38 = vrot.slane %v393_v34, 2  ;;  %v438_v39 = vrot.slane %v393_v34, 4  ;;  %v439_v41 = vrot.slane %v393_v34, 6  ;;  %v440_v44 = vrot.slane %v395_v42, 2  ;;  %704 = vperm.xlu2 %2373, %v665_v58  }
  0x21   : > { %473 = vst [vmem:[#allocation1 + $0x23] ss:$4 sm:$0xff] %v429_v16  ;;  %v394_v43 = vld [vmem:[%s2579_s26 + $0x48] sm:$0x3]  ;;  %v441_v46 = vrot.slane %v395_v42, 4  ;;  %v397_v47 = vld [vmem:[%s2579_s26 + $0x60] sm:$0xff] }
  0x22   : > { %v442_v48 = vrot.slane %v395_v42, 6  ;;  %v396_v49 = vld [vmem:[%s2579_s26 + $0x58] sm:$0x3]  ;;  %v443_v52 = vrot.slane %v397_v47, 2  ;;  %v444_v53 = vrot.slane %v397_v47, 4  ;;  %v445_v54 = vrot.slane %v397_v47, 6 }
  0x23   : > { %v398_v55 = vld [vmem:[%s2579_s26 + $0x68] sm:$0x3]  ;;  %v399_v57 = vld [vmem:[%s2579_s26 + $0x70] sm:$0xff]  ;;  %v400_v63 = vld [vmem:[%s2579_s26 + $0x78] sm:$0x3]  ;;  %s2108_s16 = sshll.u32 %s3031_s12, 4  ;;  %s2109_s16 = int_to_ptr.vmem [resolvable:$true] %s2108_s16 }
  0x24   : > { %v446_v59 = vrot.slane %v399_v57, 2  ;;  %v447_v60 = vrot.slane %v399_v57, 4  ;;  %v448_v61 = vrot.slane %v399_v57, 6  ;;  %v401_v0 = vld [vmem:[%s2579_s26 + $0x80] sm:$0xff]  ;;  %v403_v6 = vld [vmem:[%s2579_s26 + $0x90] sm:$0xff]  ;;  %v670_v10 = vld [vmem:[%s3103_s1 + $0x58] sm:$0xff] }
  0x25   : > { %v474_v22 = vld.sshfl [vmem:[#allocation1] sm:$0xff pattern:$0x73625140]  ;;  %v449_v2 = vrot.slane %v401_v0, 2  ;;  %v450_v3 = vrot.slane %v401_v0, 4  ;;  %v451_v5 = vrot.slane %v401_v0, 6 }
  0x26   : > { %714 = vperm.xlu1 %2372, %v667_v17   ;;  %709 = vperm.xlu0 %2371, %v666_v18   ;;  %476 = vst [vmem:[#allocation1] ss:$4 sm:$0xff] %v430_v20  ;;  %v452_v7 = vrot.slane %v403_v6, 2  ;;  %v453_v9 = vrot.slane %v403_v6, 4  ;;  %v402_v11 = vld [vmem:[%s2579_s26 + $0x88] sm:$0x3] }
  0x27   : > { %2179 = vmatmul.msk.f32.vlgmr.msra.gmra.mxu0 %vm529_vm0, %v474_v22  ;;  %477 = vst [vmem:[#allocation1 + $0x1] ss:$4 sm:$0xff] %v388_v21  ;;  %v454_v12 = vrot.slane %v403_v6, 6  ;;  %v404_v14 = vld [vmem:[%s2579_s26 + $0x98] sm:$0x3] }
  0x28   : > { %478 = vst [vmem:[#allocation1 + $0x2] ss:$4 sm:$0xff] %v389_v19  ;;  %v475_v28 = vld.sshfl [vmem:[#allocation1 + $0x20] sm:$0xff pattern:$0x73625140]  ;;  %719 = vperm.xlu2 %2373, %v668_v1  }
  0x29   : > { %479 = vst [vmem:[#allocation1 + $0x3] ss:$4 sm:$0xff] %v431_v23  ;;  %v2192_v19 = vld [vmem:[%s3105_s3 + $0x4] sm:$0xf]  ;;  %v778_v20 = vld [vmem:[%s3105_s3] sm:$0xf] }
  0x2a   : > { %480 = vst [vmem:[#allocation1 + $0x20] ss:$4 sm:$0xff] %v432_v24  ;;  %2193 = vmatpush.msk.msrb.mxu0 %vm821_vm1, %v2192_v19  ;;  %2325 = vmatpush.msk.msra.mxu2 %vm821_vm1, %v778_v20  ;;  %v2664_v22 = vld [vmem:[%s3107_s5] ss:$0 sm:$0xff]  ;;  %v2215_v24 = vld [vmem:[%s3105_s3 + $0x8] sm:$0xf] }
  0x2b   : > { %481 = vst [vmem:[#allocation1 + $0x21] ss:$4 sm:$0xff] %v433_v25  ;;  %2324 = vmatpush.msk.msra.mxu1 %vm821_vm1, %v2192_v19  ;;  %v2669_v23 = vld [vmem:[%s3108_s6] ss:$0 sm:$0xff]  ;;  %2326 = vmatpush.msk.msra.mxu3 %vm821_vm1, %v2215_v24 }
  0x2c   : > { %482 = vst [vmem:[#allocation1 + $0x22] ss:$4 sm:$0xff] %v390_v27  ;;  %2204 = vmatpush.msk.msra.mxu0 %vm821_vm1, %v778_v20  ;;  %v2239_v27 = vld [vmem:[%s3105_s3 + $0x10] sm:$0xf] }
  0x2d   : > { %483 = vst [vmem:[#allocation1 + $0x23] ss:$4 sm:$0xff] %v391_v30  ;;  %2240 = vmatpush.msk.msrb.mxu2 %vm821_vm1, %v2239_v27 }
  0x2e   : > { %724 = vperm.xlu0 %2371, %v669_v26   ;;  %674 = vperm.xlu1 %2372, %v659_v29  }
  0x2f   : > { %2180 = vmatmul.msk.f32.gmra.mxu0 %vm529_vm0, %v475_v28 }
  0x30   : > { %v484_v35 = vld.sshfl [vmem:[#allocation1] sm:$0xff pattern:$0x73625140]  ;;  %729 = vperm.xlu2 %2373, %v670_v10  }
  0x31   : > { %486 = vst [vmem:[#allocation1] ss:$4 sm:$0xff] %v434_v31 }
  0x32   : > { %487 = vst [vmem:[#allocation1 + $0x1] ss:$4 sm:$0xff] %v435_v32 }
  0x33   : > { %488 = vst [vmem:[#allocation1 + $0x2] ss:$4 sm:$0xff] %v436_v33 }
  0x34   : > { %v485_v40 = vld.sshfl [vmem:[#allocation1 + $0x20] sm:$0xff pattern:$0x73625140]  ;;  %489 = vst [vmem:[#allocation1 + $0x3] ss:$4 sm:$0xff] %v392_v37 }
  0x35   : > { %490 = vst [vmem:[#allocation1 + $0x20] ss:$4 sm:$0xff] %v393_v34  ;;  %v2227_v34 = vld [vmem:[%s3105_s3 + $0xc] sm:$0xf] }
  0x36   : > { %734 = vperm.xlu0 %2371, %v671_v36   ;;  %491 = vst [vmem:[#allocation1 + $0x21] ss:$4 sm:$0xff] %v437_v38  ;;  %2228 = vmatpush.msk.msrb.mxu1 %vm821_vm1, %v2227_v34 }
  0x37   : > { %2181 = vmatmul.msk.f32.gmra.mxu0 %vm529_vm0, %v484_v35  ;;  %492 = vst [vmem:[#allocation1 + $0x22] ss:$4 sm:$0xff] %v438_v39 }
  0x38   : > { %493 = vst [vmem:[#allocation1 + $0x23] ss:$4 sm:$0xff] %v439_v41 }
  0x3b   : > { %v494_v45 = vld.sshfl [vmem:[#allocation1] sm:$0xff pattern:$0x73625140] }
  0x3c   : > { %496 = vst [vmem:[#allocation1] ss:$4 sm:$0xff] %v394_v43 }
  0x3d   : > { %497 = vst [vmem:[#allocation1 + $0x1] ss:$4 sm:$0xff] %v395_v42 }
  0x3e   : > { %498 = vst [vmem:[#allocation1 + $0x2] ss:$4 sm:$0xff] %v440_v44 }
  0x3f   : > { %2182 = vmatmul.msk.f32.gmra.mxu0 %vm529_vm0, %v485_v40  ;;  %v495_v51 = vld.sshfl [vmem:[#allocation1 + $0x20] sm:$0xff pattern:$0x73625140]  ;;  %499 = vst [vmem:[#allocation1 + $0x3] ss:$4 sm:$0xff] %v441_v46 }
  0x40   : > { %500 = vst [vmem:[#allocation1 + $0x20] ss:$4 sm:$0xff] %v442_v48 }
  0x41   : > { %501 = vst [vmem:[#allocation1 + $0x21] ss:$4 sm:$0xff] %v396_v49 }
  0x42   : > { %502 = vst [vmem:[#allocation1 + $0x22] ss:$4 sm:$0xff] %v397_v47 }
  0x43   : > { %503 = vst [vmem:[#allocation1 + $0x23] ss:$4 sm:$0xff] %v443_v52 }
  0x46   : > { %v504_v56 = vld.sshfl [vmem:[#allocation1] sm:$0xff pattern:$0x73625140] }
  0x47   : > { %2183 = vmatmul.msk.f32.gmra.mxu0 %vm529_vm0, %v494_v45  ;;  %506 = vst [vmem:[#allocation1] ss:$4 sm:$0xff] %v444_v53  ;;  %v2263_v53 = vld [vmem:[%s3105_s3 + $0x18] sm:$0xf] }
  0x48   : > { %507 = vst [vmem:[#allocation1 + $0x1] ss:$4 sm:$0xff] %v445_v54 }
  0x49   : > { %508 = vst [vmem:[#allocation1 + $0x2] ss:$4 sm:$0xff] %v398_v55 }
  0x4a   : > { %v505_v62 = vld.sshfl [vmem:[#allocation1 + $0x20] sm:$0xff pattern:$0x73625140]  ;;  %509 = vst [vmem:[#allocation1 + $0x3] ss:$4 sm:$0xff] %v399_v57 }
  0x4b   : > { %510 = vst [vmem:[#allocation1 + $0x20] ss:$4 sm:$0xff] %v446_v59 }
  0x4c   : > { %511 = vst [vmem:[#allocation1 + $0x21] ss:$4 sm:$0xff] %v447_v60 }
  0x4d   : > { %512 = vst [vmem:[#allocation1 + $0x22] ss:$4 sm:$0xff] %v448_v61 }
  0x4e   : > { %513 = vst [vmem:[#allocation1 + $0x23] ss:$4 sm:$0xff] %v400_v63 }
  0x4f   : > { %2184 = vmatmul.msk.f32.gmra.mxu0 %vm529_vm0, %v495_v51 }
  0x51   : > { %v514_v4 = vld.sshfl [vmem:[#allocation1] sm:$0xff pattern:$0x73625140] }
  0x52   : > { %516 = vst [vmem:[#allocation1] ss:$4 sm:$0xff] %v401_v0 }
  0x53   : > { %517 = vst [vmem:[#allocation1 + $0x1] ss:$4 sm:$0xff] %v449_v2 }
  0x54   : > { %518 = vst [vmem:[#allocation1 + $0x2] ss:$4 sm:$0xff] %v450_v3 }
  0x55   : > { %v515_v8 = vld.sshfl [vmem:[#allocation1 + $0x20] sm:$0xff pattern:$0x73625140]  ;;  %519 = vst [vmem:[#allocation1 + $0x3] ss:$4 sm:$0xff] %v451_v5 }
  0x56   : > { %521 = vst [vmem:[#allocation1 + $0x21] ss:$4 sm:$0xff] %v403_v6 }
  0x57   : > { %2185 = vmatmul.msk.f32.gmra.mxu0 %vm529_vm0, %v504_v56  ;;  %520 = vst [vmem:[#allocation1 + $0x20] ss:$4 sm:$0xff] %v402_v11 }
  0x58   : > { %522 = vst [vmem:[#allocation1 + $0x22] ss:$4 sm:$0xff] %v452_v7 }
  0x59   : > { %523 = vst [vmem:[#allocation1 + $0x23] ss:$4 sm:$0xff] %v453_v9 }
  0x5c   : > { %v524_v13 = vld.sshfl [vmem:[#allocation1] sm:$0xff pattern:$0x73625140] }
  0x5d   : > { %526 = vst [vmem:[#allocation1] ss:$4 sm:$0xff] %v454_v12 }
  0x5e   : > { %527 = vst [vmem:[#allocation1 + $0x1] ss:$4 sm:$0xff] %v404_v14 }
  0x5f   : > { %2186 = vmatmul.msk.f32.gmra.mxu0 %vm529_vm0, %v505_v62 }
  0x60   : > { %v525_v15 = vld.sshfl [vmem:[#allocation1 + $0x20] sm:$0xff pattern:$0x73625140] }
  0x65   : > { %v528_v16 = vld.sshfl [vmem:[#allocation1] sm:$0xff pattern:$0x73625140] }
  0x67   : > { %2187 = vmatmul.msk.f32.gmra.mxu0 %vm529_vm0, %v514_v4 }
  0x6f   : > { %2188 = vmatmul.msk.f32.gmra.mxu0 %vm529_vm0, %v515_v8 }
  0x72   : > { %v700_v5 = vpop.permute.xlu2 %699 }
  0x77   : > { %2189 = vmatmul.msk.f32.gmra.mxu0 %vm529_vm0, %v524_v13 }
  0x7f   : > { %2190 = vmatmul.msk.f32.gmra.mxu0 %vm529_vm0, %v525_v15 }
  0x87   : > { %2191 = vmatmul.msk.f32.gmra.mxu0 %vm529_vm0, %v528_v16  ;;  %v705_v16 = vpop.permute.xlu2 %704 }
  0x88   : > { %v690_v17 = vpop.permute.xlu1 %689  ;;  %v680_v36 = vpop.permute.xlu0 %679 }
  0x90   : > { %v2647_v18 = vpop.permute.xlu1 %694  ;;  %v685_v43 = vpop.permute.xlu0 %684 }
  0x98   : > { %v2659_v21 = vpop.permute.xlu1 %714 }
  0xa0   : > { %v675_v29 = vpop.permute.xlu1 %674 }
  0xa4   : > { %v573_v25 = vpop.f32.mrf.mxu0 }
  0xa5   : > { %v616_v26 = vmul.f32 %v2664_v22, %v573_v25 }
  0xa7   : > { %v633_v28 = vadd.f32 %v2669_v23, %v616_v26 }
  0xa9   : > { %v646_v30 = vmax.f32 %v633_v28, 0.0 }
  0xab   : > { %v737_v31 = vmul.f32 %v675_v29, %v646_v30  ;;  %v710_v29 = vpop.permute.xlu0 %709 }
  0xac   : > { %v576_v32 = vpop.f32.mrf.mxu0 }
  0xad   : > { %751 = vst.msk [vmem:[#allocation2] sm:$0xff] %vm750_vm2, %v737_v31  ;;  %v617_v33 = vmul.f32 %v2664_v22, %v576_v32 }
  0xaf   : > { %v634_v35 = vadd.f32 %v2669_v23, %v617_v33 }
  0xb1   : > { %v647_v37 = vmax.f32 %v634_v35, 0.0 }
  0xb3   : > { %v738_v38 = vmul.f32 %v680_v36, %v647_v37 }
  0xb4   : > { %v579_v39 = vpop.f32.mrf.mxu0  ;;  %v768_v52 = vld [vmem:[#allocation2] sm:$0xff] }
  0xb5   : > { %752 = vst.msk [vmem:[#allocation2 + $0x8] sm:$0xff] %vm750_vm2, %v738_v38  ;;  %v618_v40 = vmul.f32 %v2664_v22, %v579_v39 }
  0xb7   : > { %v635_v41 = vadd.f32 %v2669_v23, %v618_v40 }
  0xb9   : > { %v648_v42 = vmax.f32 %v635_v41, 0.0 }
  0xbb   : > { %v739_v44 = vmul.f32 %v685_v43, %v648_v42 }
  0xbc   : > { %v582_v45 = vpop.f32.mrf.mxu0  ;;  %v779_v46 = vld [vmem:[#allocation2 + $0x1] sm:$0xff] }
  0xbd   : > { %v769_v47 = vld [vmem:[#allocation2 + $0x8] sm:$0xff]  ;;  %753 = vst.msk [vmem:[#allocation2 + $0x10] sm:$0xff] %vm750_vm2, %v739_v44  ;;  %v619_v48 = vmul.f32 %v2664_v22, %v582_v45  ;;  %2194 = vmatmul.msk.f32.vlgmr.msrb.gmra.mxu0 %vm750_vm2, %v779_v46 }
  0xbe   : > { %2206 = vmatmul.msk.f32.vlgmr.msra.gmra.mxu2 %vm750_vm2, %v769_v47  ;;  %2216 = vmatpush.msk.msrb.mxu0 %vm821_vm1, %v2215_v24  ;;  %v952_v62 = vld [vmem:[#allocation2 + $0x2] sm:$0xff]  ;;  %v2251_v46 = vld [vmem:[%s3105_s3 + $0x14] sm:$0xf]  ;;  %v2275_v47 = vld [vmem:[%s3105_s3 + $0x1c] sm:$0xf] }
  0xbf   : > { %v636_v49 = vadd.f32 %v2669_v23, %v619_v48  ;;  %2252 = vmatpush.msk.msrb.mxu3 %vm821_vm1, %v2251_v46 }
  0xc1   : > { %v649_v50 = vmax.f32 %v636_v49, 0.0  ;;  %v2445_v49 = vmov 0.0  }
  0xc2   : > { %765 = vst.msk [vmem:[#allocation2 + $0x64] sm:$0xff] %vm750_vm2, %v2445_v49 }
  0xc3   : > { %v740_v51 = vmul.f32 %v690_v17, %v649_v50 }
  0xc4   : > { %v585_v54 = vpop.f32.mrf.mxu0  ;;  %v780_v55 = vld [vmem:[#allocation2 + $0x9] sm:$0xff] }
  0xc5   : > { %v770_v56 = vld [vmem:[#allocation2 + $0x10] sm:$0xff]  ;;  %754 = vst.msk [vmem:[#allocation2 + $0x18] sm:$0xff] %vm750_vm2, %v740_v51  ;;  %v620_v58 = vmul.f32 %v2664_v22, %v585_v54  ;;  %2195 = vmatmul.msk.f32.vlgmr.msra.gmra.mxu1 %vm750_vm2, %v780_v55  ;;  %2205 = vmatmul.msk.f32.vlgmr.msra.gmra.mxu0 %vm750_vm2, %v768_v52  ;;  %v720_v51 = vpop.permute.xlu2 %719 }
  0xc6   : > { %v2700_v57 = vld [vmem:[#allocation2 + $0xa] sm:$0xff]  ;;  %2207 = vmatmul.msk.f32.gmra.mxu2 %vm750_vm2, %v770_v56  ;;  %2264 = vmatpush.msk.msra.mxu0 %vm821_vm1, %v2263_v53 }
  0xc7   : > { %2218 = vmatmul.msk.f32.vlgmr.msra.gmra.mxu3 %vm750_vm2, %v2700_v57  ;;  %v637_v59 = vadd.f32 %v2669_v23, %v620_v58  ;;  %2276 = vmatpush.msk.msra.mxu1 %vm821_vm1, %v2275_v47 }
  0xc9   : > { %v650_v60 = vmax.f32 %v637_v59, 0.0 }
  0xcb   : > { %v741_v61 = vmul.f32 %v2647_v18, %v650_v60 }
  0xcc   : > { %v588_v63 = vpop.f32.mrf.mxu0  ;;  %v781_v0 = vld [vmem:[#allocation2 + $0x11] sm:$0xff] }
  0xcd   : > { %v771_v1 = vld [vmem:[#allocation2 + $0x18] sm:$0xff]  ;;  %755 = vst.msk [vmem:[#allocation2 + $0x20] sm:$0xff] %vm750_vm2, %v741_v61  ;;  %v621_v3 = vmul.f32 %v2664_v22, %v588_v63  ;;  %2196 = vmatmul.msk.f32.gmra.mxu1 %vm750_vm2, %v781_v0  ;;  %2217 = vmatmul.msk.f32.vlgmr.msrb.gmra.mxu0 %vm750_vm2, %v952_v62  ;;  %v725_v62 = vpop.permute.xlu0 %724 }
  0xce   : > { %v2712_v2 = vld [vmem:[#allocation2 + $0x12] sm:$0xff]  ;;  %2208 = vmatmul.msk.f32.gmra.mxu2 %vm750_vm2, %v771_v1 }
  0xcf   : > { %2219 = vmatmul.msk.f32.gmra.mxu3 %vm750_vm2, %v2712_v2  ;;  %v638_v4 = vadd.f32 %v2669_v23, %v621_v3  ;;  %v2722_v8 = vld [vmem:[#allocation2 + $0x14] sm:$0xff] }
  0xd1   : > { %v651_v6 = vmax.f32 %v638_v4, 0.0 }
  0xd3   : > { %v742_v7 = vmul.f32 %v700_v5, %v651_v6 }
  0xd4   : > { %v591_v9 = vpop.f32.mrf.mxu0  ;;  %v782_v10 = vld [vmem:[#allocation2 + $0x19] sm:$0xff] }
  0xd5   : > { %v772_v11 = vld [vmem:[#allocation2 + $0x20] sm:$0xff]  ;;  %756 = vst.msk [vmem:[#allocation2 + $0x28] sm:$0xff] %vm750_vm2, %v742_v7  ;;  %v622_v13 = vmul.f32 %v2664_v22, %v591_v9  ;;  %2197 = vmatmul.msk.f32.gmra.mxu1 %vm750_vm2, %v782_v10  ;;  %2265 = vmatmul.msk.f32.vlgmr.msra.gmra.mxu0 %vm750_vm2, %v2722_v8  ;;  %v730_v10 = vpop.permute.xlu2 %729 }
  0xd6   : > { %v2724_v12 = vld [vmem:[#allocation2 + $0x1a] sm:$0xff]  ;;  %2209 = vmatmul.msk.f32.gmra.mxu2 %vm750_vm2, %v772_v11 }
  0xd7   : > { %2220 = vmatmul.msk.f32.gmra.mxu3 %vm750_vm2, %v2724_v12  ;;  %v639_v14 = vadd.f32 %v2669_v23, %v622_v13  ;;  %v2735_v18 = vld [vmem:[#allocation2 + $0x1c] sm:$0xff] }
  0xd8   : > { %v1565_v46 = vld [vmem:[#allocation2 + $0x1e] sm:$0xff] }
  0xd9   : > { %v652_v15 = vmax.f32 %v639_v14, 0.0 }
  0xdb   : > { %v743_v17 = vmul.f32 %v705_v16, %v652_v15 }
  0xdc   : > { %v594_v19 = vpop.f32.mrf.mxu0  ;;  %v783_v20 = vld [vmem:[#allocation2 + $0x21] sm:$0xff] }
  0xdd   : > { %v773_v24 = vld [vmem:[#allocation2 + $0x28] sm:$0xff]  ;;  %757 = vst.msk [vmem:[#allocation2 + $0x30] sm:$0xff] %vm750_vm2, %v743_v17  ;;  %v623_v26 = vmul.f32 %v2664_v22, %v594_v19  ;;  %2198 = vmatmul.msk.f32.gmra.mxu1 %vm750_vm2, %v783_v20  ;;  %2266 = vmatmul.msk.f32.gmra.mxu0 %vm750_vm2, %v2735_v18 }
  0xde   : > { %v2737_v25 = vld [vmem:[#allocation2 + $0x22] sm:$0xff]  ;;  %2210 = vmatmul.msk.f32.gmra.mxu2 %vm750_vm2, %v773_v24  ;;  %v1156_v19 = vld [vmem:[#allocation2 + $0xb] sm:$0xff] }
  0xdf   : > { %2221 = vmatmul.msk.f32.gmra.mxu3 %vm750_vm2, %v2737_v25  ;;  %v640_v27 = vadd.f32 %v2669_v23, %v623_v26  ;;  %v2748_v31 = vld [vmem:[#allocation2 + $0x24] sm:$0xff]  ;;  %v735_v26 = vpop.permute.xlu0 %734 }
  0xe1   : > { %v653_v28 = vmax.f32 %v640_v27, 0.0 }
  0xe3   : > { %v744_v30 = vmul.f32 %v710_v29, %v653_v28  ;;  %v1258_v29 = vld [vmem:[#allocation2 + $0xc] sm:$0xff] }
  0xe4   : > { %v597_v32 = vpop.f32.mrf.mxu0  ;;  %v784_v33 = vld [vmem:[#allocation2 + $0x29] sm:$0xff] }
  0xe5   : > { %v774_v34 = vld [vmem:[#allocation2 + $0x30] sm:$0xff]  ;;  %758 = vst.msk [vmem:[#allocation2 + $0x38] sm:$0xff] %vm750_vm2, %v744_v30  ;;  %v624_v36 = vmul.f32 %v2664_v22, %v597_v32  ;;  %2199 = vmatmul.msk.f32.gmra.mxu1 %vm750_vm2, %v784_v33  ;;  %2267 = vmatmul.msk.f32.gmra.mxu0 %vm750_vm2, %v2748_v31  ;;  %v1159_v32 = vld [vmem:[#allocation2 + $0x23] sm:$0xff] }
  0xe6   : > { %v2750_v35 = vld [vmem:[#allocation2 + $0x2a] sm:$0xff]  ;;  %2211 = vmatmul.msk.f32.gmra.mxu2 %vm750_vm2, %v774_v34 }
  0xe7   : > { %2222 = vmatmul.msk.f32.gmra.mxu3 %vm750_vm2, %v2750_v35  ;;  %v641_v37 = vadd.f32 %v2669_v23, %v624_v36  ;;  %v2762_v40 = vld [vmem:[#allocation2 + $0x2c] sm:$0xff] }
  0xe9   : > { %v654_v38 = vmax.f32 %v641_v37, 0.0 }
  0xeb   : > { %v745_v39 = vmul.f32 %v2659_v21, %v654_v38  ;;  %v2287_v21 = vld [vmem:[%s3105_s3 + $0x20] sm:$0xf] }
  0xec   : > { %v600_v41 = vpop.f32.mrf.mxu0  ;;  %v785_v42 = vld [vmem:[#allocation2 + $0x31] sm:$0xff]  ;;  %2288 = vmatpush.msk.msra.mxu2 %vm821_vm1, %v2287_v21 }
  0xed   : > { %v775_v43 = vld [vmem:[#allocation2 + $0x38] sm:$0xff]  ;;  %759 = vst.msk [vmem:[#allocation2 + $0x40] sm:$0xff] %vm750_vm2, %v745_v39  ;;  %v625_v45 = vmul.f32 %v2664_v22, %v600_v41  ;;  %2200 = vmatmul.msk.f32.gmra.mxu1 %vm750_vm2, %v785_v42  ;;  %2268 = vmatmul.msk.f32.gmra.mxu0 %vm750_vm2, %v2762_v40 }
  0xee   : > { %v2764_v44 = vld [vmem:[#allocation2 + $0x32] sm:$0xff]  ;;  %2212 = vmatmul.msk.f32.gmra.mxu2 %vm750_vm2, %v775_v43 }
  0xef   : > { %2223 = vmatmul.msk.f32.gmra.mxu3 %vm750_vm2, %v2764_v44  ;;  %v642_v48 = vadd.f32 %v2669_v23, %v625_v45  ;;  %v2788_v53 = vld [vmem:[#allocation2 + $0x34] sm:$0xff] }
  0xf0   : > { %v1564_v42 = vld [vmem:[#allocation2 + $0x16] sm:$0xff] }
  0xf1   : > { %v655_v50 = vmax.f32 %v642_v48, 0.0  ;;  %v1462_v21 = vld [vmem:[#allocation2 + $0x15] sm:$0xff] }
  0xf3   : > { %v746_v52 = vmul.f32 %v720_v51, %v655_v50  ;;  %v1463_v50 = vld [vmem:[#allocation2 + $0x1d] sm:$0xff]  ;;  %v1566_v51 = vld [vmem:[#allocation2 + $0x26] sm:$0xff] }
  0xf4   : > { %v603_v54 = vpop.f32.mrf.mxu0  ;;  %v786_v55 = vld [vmem:[#allocation2 + $0x39] sm:$0xff] }
  0xf5   : > { %v776_v56 = vld [vmem:[#allocation2 + $0x40] sm:$0xff]  ;;  %760 = vst.msk [vmem:[#allocation2 + $0x48] sm:$0xff] %vm750_vm2, %v746_v52  ;;  %v626_v59 = vmul.f32 %v2664_v22, %v603_v54  ;;  %2201 = vmatmul.msk.f32.gmra.mxu1 %vm750_vm2, %v786_v55  ;;  %2269 = vmatmul.msk.f32.gmra.mxu0 %vm750_vm2, %v2788_v53 }
  0xf6   : > { %v2790_v58 = vld [vmem:[#allocation2 + $0x3a] sm:$0xff]  ;;  %2213 = vmatmul.msk.f32.gmra.mxu2 %vm750_vm2, %v776_v56  ;;  %v1464_v56 = vld [vmem:[#allocation2 + $0x25] sm:$0xff] }
  0xf7   : > { %2224 = vmatmul.msk.f32.gmra.mxu3 %vm750_vm2, %v2790_v58  ;;  %v643_v60 = vadd.f32 %v2669_v23, %v626_v59  ;;  %v2801_v0 = vld [vmem:[#allocation2 + $0x3c] sm:$0xff] }
  0xf9   : > { %v656_v61 = vmax.f32 %v643_v60, 0.0 }
  0xfb   : > { %v747_v63 = vmul.f32 %v725_v62, %v656_v61 }
  0xfc   : > { %v606_v1 = vpop.f32.mrf.mxu0  ;;  %v787_v3 = vld [vmem:[#allocation2 + $0x41] sm:$0xff] }
  0xfd   : > { %v777_v4 = vld [vmem:[#allocation2 + $0x48] sm:$0xff]  ;;  %761 = vst.msk [vmem:[#allocation2 + $0x50] sm:$0xff] %vm750_vm2, %v747_v63  ;;  %v627_v6 = vmul.f32 %v2664_v22, %v606_v1  ;;  %2202 = vmatmul.msk.f32.gmra.mxu1 %vm750_vm2, %v787_v3  ;;  %2270 = vmatmul.msk.f32.gmra.mxu0 %vm750_vm2, %v2801_v0  ;;  %v1568_v3 = vld [vmem:[#allocation2 + $0x36] sm:$0xff] }
  0xfe   : > { %v2803_v5 = vld [vmem:[#allocation2 + $0x42] sm:$0xff]  ;;  %2214 = vmatmul.msk.f32.gmra.mxu2 %vm750_vm2, %v777_v4  ;;  %v1465_v1 = vld [vmem:[#allocation2 + $0x2d] sm:$0xff]  ;;  %v1704_v4 = vld [vmem:[%s3106_s4] sm:$0xf] }
  0xff   : > { %2225 = vmatmul.msk.f32.gmra.mxu3 %vm750_vm2, %v2803_v5  ;;  %v644_v7 = vadd.f32 %v2669_v23, %v627_v6  ;;  %v1366_v16 = vld [vmem:[#allocation2 + $0x44] sm:$0xff] }
 0x100   : > { %2299 = vmatpush.msk.msra.mxu3 %vm821_vm1, %v1704_v4 }
 0x101   : > { %v657_v9 = vmax.f32 %v644_v7, 0.0 }
 0x103   : > { %v748_v11 = vmul.f32 %v730_v10, %v657_v9 }
 0x104   : > { %v609_v13 = vpop.f32.mrf.mxu0  ;;  %v788_v14 = vld [vmem:[#allocation2 + $0x49] sm:$0xff] }
 0x105   : > { %v961_v15 = vld [vmem:[#allocation2 + $0x4a] sm:$0xff]  ;;  %762 = vst.msk [vmem:[#allocation2 + $0x58] sm:$0xff] %vm750_vm2, %v748_v11  ;;  %v628_v17 = vmul.f32 %v2664_v22, %v609_v13  ;;  %2203 = vmatmul.msk.f32.gmra.mxu1 %vm750_vm2, %v788_v14  ;;  %2271 = vmatmul.msk.f32.gmra.mxu0 %vm750_vm2, %v1366_v16  ;;  %v1157_v22 = vld [vmem:[#allocation2 + $0x13] sm:$0xff]  ;;  %v1569_v14 = vld [vmem:[#allocation2 + $0x3e] sm:$0xff] }
 0x106   : > { %2241 = vmatmul.msk.f32.vlgmr.msrb.gmra.mxu2 %vm750_vm2, %v1156_v19  ;;  %v1367_v28 = vld [vmem:[#allocation2 + $0x4c] sm:$0xff]  ;;  %v1466_v13 = vld [vmem:[#allocation2 + $0x35] sm:$0xff] }
 0x107   : > { %2226 = vmatmul.msk.f32.gmra.mxu3 %vm750_vm2, %v961_v15  ;;  %v645_v20 = vadd.f32 %v2669_v23, %v628_v17  ;;  %v1158_v23 = vld [vmem:[#allocation2 + $0x1b] sm:$0xff]  ;;  %v1164_v33 = vld [vmem:[#allocation2 + $0x4b] sm:$0xff] }
 0x109   : > { %v658_v24 = vmax.f32 %v645_v20, 0.0 }
 0x10b   : > { %v749_v27 = vmul.f32 %v735_v26, %v658_v24  ;;  %v1467_v24 = vld [vmem:[#allocation2 + $0x3d] sm:$0xff]  ;;  %v1570_v26 = vld [vmem:[#allocation2 + $0x46] sm:$0xff] }
 0x10c   : > { %v1368_v30 = vld [vmem:[#allocation2 + $0x54] sm:$0xff] }
 0x10d   : > { %764 = vst.msk [vmem:[#allocation2 + $0x60] sm:$0xf] %vm763_vm3, %v749_v27  ;;  %2229 = vmatmul.msk.f32.vlgmr.msrb.gmra.mxu1 %vm750_vm2, %v2700_v57  ;;  %2272 = vmatmul.msk.f32.gmra.mxu0 %vm750_vm2, %v1367_v28  ;;  %v1165_v37 = vld [vmem:[#allocation2 + $0x53] sm:$0xff] }
 0x10e   : > { %2242 = vmatmul.msk.f32.gmra.mxu2 %vm750_vm2, %v1157_v22  ;;  %v1063_v41 = vld [vmem:[#allocation2 + $0x52] sm:$0xff] }
 0x10f   : > { %2253 = vmatmul.msk.f32.vlgmr.msrb.gmra.mxu3 %vm750_vm2, %v1258_v29 }
 0x114   : > { %v1369_v57 = vld [vmem:[#allocation2 + $0x5c] sm:$0xff] }
 0x115   : > { %2230 = vmatmul.msk.f32.gmra.mxu1 %vm750_vm2, %v2712_v2  ;;  %2273 = vmatmul.msk.f32.gmra.mxu0 %vm750_vm2, %v1368_v30  ;;  %v1160_v2 = vld [vmem:[#allocation2 + $0x2b] sm:$0xff] }
 0x116   : > { %2243 = vmatmul.msk.f32.gmra.mxu2 %vm750_vm2, %v1158_v23 }
 0x117   : > { %2254 = vmatmul.msk.f32.gmra.mxu3 %vm750_vm2, %v2722_v8  ;;  %v1161_v8 = vld [vmem:[#allocation2 + $0x33] sm:$0xff] }
 0x11d   : > { %2231 = vmatmul.msk.f32.gmra.mxu1 %vm750_vm2, %v2724_v12  ;;  %2274 = vmatmul.msk.f32.gmra.mxu0 %vm750_vm2, %v1369_v57  ;;  %v1162_v12 = vld [vmem:[#allocation2 + $0x3b] sm:$0xff] }
 0x11e   : > { %2244 = vmatmul.msk.f32.gmra.mxu2 %vm750_vm2, %v1159_v32 }
 0x11f   : > { %2255 = vmatmul.msk.f32.gmra.mxu3 %vm750_vm2, %v2735_v18  ;;  %v1163_v18 = vld [vmem:[#allocation2 + $0x43] sm:$0xff] }
 0x125   : > { %2232 = vmatmul.msk.f32.gmra.mxu1 %vm750_vm2, %v2737_v25 }
 0x126   : > { %2245 = vmatmul.msk.f32.gmra.mxu2 %vm750_vm2, %v1160_v2  ;;  %v1468_v2 = vld [vmem:[#allocation2 + $0x45] sm:$0xff] }
 0x127   : > { %2256 = vmatmul.msk.f32.gmra.mxu3 %vm750_vm2, %v2748_v31 }
 0x12d   : > { %2233 = vmatmul.msk.f32.gmra.mxu1 %vm750_vm2, %v2750_v35 }
 0x12e   : > { %2246 = vmatmul.msk.f32.gmra.mxu2 %vm750_vm2, %v1161_v8  ;;  %v1571_v8 = vld [vmem:[#allocation2 + $0x4e] sm:$0xff] }
 0x12f   : > { %2257 = vmatmul.msk.f32.gmra.mxu3 %vm750_vm2, %v2762_v40 }
 0x135   : > { %2234 = vmatmul.msk.f32.gmra.mxu1 %vm750_vm2, %v2764_v44 }
 0x136   : > { %2247 = vmatmul.msk.f32.gmra.mxu2 %vm750_vm2, %v1162_v12 }
 0x137   : > { %2258 = vmatmul.msk.f32.gmra.mxu3 %vm750_vm2, %v2788_v53 }
 0x13a   : > { %v842_v61 = vpop.f32.mrf.mxu0 }
 0x13d   : > { %2235 = vmatmul.msk.f32.gmra.mxu1 %vm750_vm2, %v2790_v58  ;;  %v1567_v58 = vld [vmem:[#allocation2 + $0x2e] sm:$0xff] }
 0x13e   : > { %2248 = vmatmul.msk.f32.gmra.mxu2 %vm750_vm2, %v1163_v18 }
 0x13f   : > { %2259 = vmatmul.msk.f32.gmra.mxu3 %vm750_vm2, %v2801_v0 }
 0x141   : > { %v2858_v25 = vpop.f32.mrf.mxu2 }
 0x142   : > { %v2860_v31 = vpop.f32.mrf.mxu1  ;;  %v922_v11 = vpop.f32.mrf.mxu0 }
 0x143   : > { %v926_v18 = vadd.f32 %v2858_v25, %v2860_v31  ;;  %v1470_v31 = vld [vmem:[#allocation2 + $0x55] sm:$0xff] }
 0x145   : > { %2236 = vmatmul.msk.f32.gmra.mxu1 %vm750_vm2, %v2803_v5 }
 0x146   : > { %2249 = vmatmul.msk.f32.gmra.mxu2 %vm750_vm2, %v1164_v33 }
 0x147   : > { %2260 = vmatmul.msk.f32.gmra.mxu3 %vm750_vm2, %v1366_v16 }
 0x149   : > { %v2866_v34 = vpop.f32.mrf.mxu2 }
 0x14a   : > { %v2868_v35 = vpop.f32.mrf.mxu3  ;;  %v2870_v36 = vpop.f32.mrf.mxu1 }
 0x14b   : > { %v1014_v27 = vpop.f32.mrf.mxu0  ;;  %v1045_v33 = vadd.f32 %v2868_v35, %v926_v18  ;;  %v1573_v35 = vld [vmem:[#allocation2 + $0x5e] sm:$0xff] }
 0x14d   : > { %2237 = vmatmul.msk.f32.gmra.mxu1 %vm750_vm2, %v961_v15 }
 0x14e   : > { %2250 = vmatmul.msk.f32.gmra.mxu2 %vm750_vm2, %v1165_v37 }
 0x14f   : > { %2261 = vmatmul.msk.f32.gmra.mxu3 %vm750_vm2, %v1367_v28  ;;  %v923_v28 = vadd.f32 %v922_v11, %v842_v61 }
 0x151   : > { %v2875_v38 = vpop.f32.mrf.mxu2  ;;  %v1044_v22 = vadd.f32 %v1014_v27, %v923_v28 }
 0x152   : > { %v2877_v39 = vpop.f32.mrf.mxu3  ;;  %v2879_v40 = vpop.f32.mrf.mxu1 }
 0x155   : > { %2238 = vmatmul.msk.f32.gmra.mxu1 %vm750_vm2, %v1063_v41 }
 0x156   : > { %2289 = vmatmul.msk.f32.vlgmr.msra.gmra.mxu2 %vm750_vm2, %v1564_v42 }
 0x157   : > { %2262 = vmatmul.msk.f32.gmra.mxu3 %vm750_vm2, %v1368_v30 }
 0x159   : > { %v2884_v43 = vpop.f32.mrf.mxu2 }
 0x15a   : > { %v2886_v44 = vpop.f32.mrf.mxu3  ;;  %v2888_v45 = vpop.f32.mrf.mxu1 }
 0x15d   : > { %2277 = vmatmul.msk.f32.vlgmr.msra.gmra.mxu1 %vm750_vm2, %v1462_v21  ;;  %v1469_v21 = vld [vmem:[#allocation2 + $0x4d] sm:$0xff] }
 0x15e   : > { %2290 = vmatmul.msk.f32.gmra.mxu2 %vm750_vm2, %v1565_v46  ;;  %v1572_v46 = vld [vmem:[#allocation2 + $0x56] sm:$0xff] }
 0x161   : > { %v2892_v47 = vpop.f32.mrf.mxu2 }
 0x162   : > { %v2894_v48 = vpop.f32.mrf.mxu3  ;;  %v2896_v49 = vpop.f32.mrf.mxu1 }
 0x165   : > { %2278 = vmatmul.msk.f32.gmra.mxu1 %vm750_vm2, %v1463_v50 }
 0x166   : > { %2291 = vmatmul.msk.f32.gmra.mxu2 %vm750_vm2, %v1566_v51  ;;  %v929_v51 = vadd.f32 %v2866_v34, %v2870_v36  ;;  %v1471_v36 = vld [vmem:[#allocation2 + $0x5d] sm:$0xff] }
 0x169   : > { %v940_v52 = vpop.f32.mrf.mxu2 }
 0x16a   : > { %v2900_v53 = vpop.f32.mrf.mxu3  ;;  %v860_v54 = vpop.f32.mrf.mxu1 }
 0x16b   : > { %v941_v55 = vadd.f32 %v940_v52, %v860_v54  ;;  %v1046_v52 = vadd.f32 %v2877_v39, %v929_v51 }
 0x16d   : > { %2279 = vmatmul.msk.f32.gmra.mxu1 %vm750_vm2, %v1464_v56 }
 0x16e   : > { %2292 = vmatmul.msk.f32.gmra.mxu2 %vm750_vm2, %v1567_v58  ;;  %v932_v58 = vadd.f32 %v2875_v38, %v2879_v40  ;;  %v938_v38 = vadd.f32 %v2892_v47, %v2896_v49  ;;  %v1422_v47 = vpop.f32.mrf.mxu0 }
 0x170   : > { %v1049_v40 = vadd.f32 %v2900_v53, %v938_v38 }
 0x171   : > { %v943_v59 = vpop.f32.mrf.mxu2 }
 0x172   : > { %v1032_v60 = vpop.f32.mrf.mxu3  ;;  %v863_v63 = vpop.f32.mrf.mxu1 }
 0x173   : > { %v2904_v62 = vadd.f32 %v1032_v60, %v941_v55  ;;  %v944_v0 = vadd.f32 %v943_v59, %v863_v63  ;;  %v1047_v59 = vadd.f32 %v2886_v44, %v932_v58  ;;  %v935_v63 = vadd.f32 %v2884_v43, %v2888_v45 }
 0x175   : > { %2280 = vmatmul.msk.f32.gmra.mxu1 %vm750_vm2, %v1465_v1 }
 0x176   : > { %2293 = vmatmul.msk.f32.gmra.mxu2 %vm750_vm2, %v1568_v3  ;;  %v1425_v27 = vpop.f32.mrf.mxu0 }
 0x179   : > { %v946_v5 = vpop.f32.mrf.mxu2 }
 0x17a   : > { %v1035_v6 = vpop.f32.mrf.mxu3  ;;  %v866_v9 = vpop.f32.mrf.mxu1 }
 0x17b   : > { %v2912_v7 = vadd.f32 %v1035_v6, %v944_v0  ;;  %v947_v10 = vadd.f32 %v946_v5, %v866_v9  ;;  %v1048_v0 = vadd.f32 %v2894_v48, %v935_v63 }
 0x17d   : > { %2281 = vmatmul.msk.f32.gmra.mxu1 %vm750_vm2, %v1466_v13 }
 0x17e   : > { %2294 = vmatmul.msk.f32.gmra.mxu2 %vm750_vm2, %v1569_v14 }
 0x181   : > { %v949_v15 = vpop.f32.mrf.mxu2 }
 0x182   : > { %v1038_v16 = vpop.f32.mrf.mxu3  ;;  %v869_v19 = vpop.f32.mrf.mxu1 }
 0x183   : > { %v2916_v17 = vadd.f32 %v1038_v16, %v947_v10  ;;  %v950_v20 = vadd.f32 %v949_v15, %v869_v19 }
 0x185   : > { %2282 = vmatmul.msk.f32.gmra.mxu1 %vm750_vm2, %v1467_v24 }
 0x186   : > { %2295 = vmatmul.msk.f32.gmra.mxu2 %vm750_vm2, %v1570_v26 }
 0x189   : > { %v1218_v30 = vpop.f32.mrf.mxu2 }
 0x18a   : > { %v1041_v29 = vpop.f32.mrf.mxu3  ;;  %v1116_v57 = vpop.f32.mrf.mxu1 }
 0x18b   : > { %v2920_v23 = vadd.f32 %v1041_v29, %v950_v20  ;;  %v1146_v32 = vadd.f32 %v1116_v57, %v1044_v22 }
 0x18d   : > { %2283 = vmatmul.msk.f32.gmra.mxu1 %vm750_vm2, %v1468_v2  ;;  %v1248_v12 = vadd.f32 %v1218_v30, %v1146_v32  ;;  %v1428_v2 = vpop.f32.mrf.mxu0 }
 0x18e   : > { %2296 = vmatmul.msk.f32.gmra.mxu2 %vm750_vm2, %v1571_v8 }
 0x191   : > { %v1221_v37 = vpop.f32.mrf.mxu2 }
 0x192   : > { %v1119_v41 = vpop.f32.mrf.mxu1  ;;  %v1320_v48 = vpop.f32.mrf.mxu3 }
 0x193   : > { %v1147_v42 = vadd.f32 %v1119_v41, %v1045_v33  ;;  %v1350_v30 = vadd.f32 %v1320_v48, %v1248_v12 }
 0x195   : > { %2284 = vmatmul.msk.f32.gmra.mxu1 %vm750_vm2, %v1469_v21  ;;  %v1249_v50 = vadd.f32 %v1221_v37, %v1147_v42  ;;  %v1452_v32 = vadd.f32 %v1422_v47, %v1350_v30 }
 0x196   : > { %2297 = vmatmul.msk.f32.gmra.mxu2 %vm750_vm2, %v1572_v46 }
 0x199   : > { %v1224_v54 = vpop.f32.mrf.mxu2 }
 0x19a   : > { %v1122_v55 = vpop.f32.mrf.mxu1  ;;  %v1323_v49 = vpop.f32.mrf.mxu3 }
 0x19b   : > { %v1148_v25 = vadd.f32 %v1122_v55, %v1046_v52  ;;  %v1351_v33 = vadd.f32 %v1323_v49, %v1249_v50  ;;  %v1431_v55 = vpop.f32.mrf.mxu0 }
 0x19d   : > { %2285 = vmatmul.msk.f32.gmra.mxu1 %vm750_vm2, %v1470_v31  ;;  %v1250_v56 = vadd.f32 %v1224_v54, %v1148_v25  ;;  %v1453_v46 = vadd.f32 %v1425_v27, %v1351_v33 }
 0x19e   : > { %2298 = vmatmul.msk.f32.gmra.mxu2 %vm750_vm2, %v1573_v35 }
 0x1a1   : > { %v1227_v60 = vpop.f32.mrf.mxu2 }
 0x1a2   : > { %v1125_v61 = vpop.f32.mrf.mxu1  ;;  %v1326_v22 = vpop.f32.mrf.mxu3 }
 0x1a3   : > { %v1149_v34 = vadd.f32 %v1125_v61, %v1047_v59  ;;  %v1352_v25 = vadd.f32 %v1326_v22, %v1250_v56 }
 0x1a5   : > { %2286 = vmatmul.msk.f32.gmra.mxu1 %vm750_vm2, %v1471_v36  ;;  %v2938_v39 = vadd.f32 %v1227_v60, %v1149_v34  ;;  %v1454_v59 = vadd.f32 %v1428_v2, %v1352_v25 }
 0x1a9   : > { %v1230_v1 = vpop.f32.mrf.mxu2 }
 0x1aa   : > { %v1128_v3 = vpop.f32.mrf.mxu1  ;;  %v1329_v37 = vpop.f32.mrf.mxu3 }
 0x1ab   : > { %v1150_v4 = vadd.f32 %v1128_v3, %v1048_v0  ;;  %v1353_v63 = vadd.f32 %v1329_v37, %v2938_v39 }
 0x1ad   : > { %v2943_v5 = vadd.f32 %v1230_v1, %v1150_v4  ;;  %v1434_v1 = vpop.f32.mrf.mxu0  ;;  %v1455_v38 = vadd.f32 %v1431_v55, %v1353_v63 }
 0x1b1   : > { %v1233_v44 = vpop.f32.mrf.mxu2 }
 0x1b2   : > { %v1131_v6 = vpop.f32.mrf.mxu1  ;;  %v1332_v50 = vpop.f32.mrf.mxu3 }
 0x1b3   : > { %v1151_v9 = vadd.f32 %v1131_v6, %v1049_v40 }
 0x1b5   : > { %v2948_v10 = vadd.f32 %v1233_v44, %v1151_v9 }
 0x1b9   : > { %v1236_v11 = vpop.f32.mrf.mxu2 }
 0x1ba   : > { %v1134_v13 = vpop.f32.mrf.mxu1  ;;  %v1335_v3 = vpop.f32.mrf.mxu3 }
 0x1bb   : > { %v1152_v43 = vadd.f32 %v1134_v13, %v2904_v62 }
 0x1bd   : > { %v2951_v45 = vadd.f32 %v1236_v11, %v1152_v43  ;;  %v1354_v11 = vadd.f32 %v1332_v50, %v2943_v5  ;;  %v1437_v43 = vpop.f32.mrf.mxu0 }
 0x1c1   : > { %v1239_v14 = vpop.f32.mrf.mxu2 }
 0x1c2   : > { %v1137_v15 = vpop.f32.mrf.mxu1  ;;  %v1338_v47 = vpop.f32.mrf.mxu3 }
 0x1c3   : > { %v1153_v16 = vadd.f32 %v1137_v15, %v2912_v7 }
 0x1c5   : > { %v2954_v19 = vadd.f32 %v1239_v14, %v1153_v16  ;;  %v1456_v14 = vadd.f32 %v1434_v1, %v1354_v11  ;;  %v1440_v22 = vpop.f32.mrf.mxu0 }
 0x1c9   : > { %v1242_v53 = vpop.f32.mrf.mxu2 }
 0x1ca   : > { %v1140_v20 = vpop.f32.mrf.mxu1  ;;  %v1341_v2 = vpop.f32.mrf.mxu3 }
 0x1cb   : > { %v1154_v24 = vadd.f32 %v1140_v20, %v2916_v17  ;;  %v2965_v17 = vld [vmem:[%s3109_s7] ss:$0 sm:$0xff]  ;;  %v1355_v20 = vadd.f32 %v1335_v3, %v2948_v10 }
 0x1cd   : > { %v2957_v26 = vadd.f32 %v1242_v53, %v1154_v24 }
 0x1d1   : > { %v1245_v28 = vpop.f32.mrf.mxu2 }
 0x1d2   : > { %v1143_v62 = vpop.f32.mrf.mxu1 }
 0x1d3   : > { %v1155_v29 = vadd.f32 %v1143_v62, %v2920_v23  ;;  %v2970_v23 = vld [vmem:[%s3110_s8] ss:$0 sm:$0xff] }
 0x1d5   : > { %v2960_v57 = vadd.f32 %v1245_v28, %v1155_v29  ;;  %v1457_v28 = vadd.f32 %v1437_v43, %v1355_v20 }
 0x1d9   : > { %v1626_v7 = vpop.f32.mrf.mxu2 }
 0x1da   : > { %v1524_v8 = vpop.f32.mrf.mxu1 }
 0x1db   : > { %v1554_v18 = vadd.f32 %v1524_v8, %v1452_v32  ;;  %v1356_v32 = vadd.f32 %v1338_v47, %v2951_v45  ;;  %v1344_v45 = vpop.f32.mrf.mxu3  ;;  %v2310_v47 = vld [vmem:[%s2579_s26 + $0x11] sm:$0xff] }
 0x1dc   : > { %v1890_v20 = vrot.slane %v2310_v47, 6 }
 0x1dd   : > { %v1656_v41 = vadd.f32 %v1626_v7, %v1554_v18  ;;  %v1458_v37 = vadd.f32 %v1440_v22, %v1356_v32  ;;  %v2311_v32 = vld [vmem:[%s2579_s26 + $0x21] sm:$0xff] }
 0x1df   : > { %v1670_v12 = vmul.f32 %v2965_v17, %v1656_v41 }
 0x1e1   : > { %v1684_v42 = vadd.f32 %v2970_v23, %v1670_v12  ;;  %v1629_v21 = vpop.f32.mrf.mxu2 }
 0x1e2   : > { %v1527_v51 = vpop.f32.mrf.mxu1 }
 0x1e3   : > { %v1694_v52 = vmax.f32 %v1684_v42, 0.0  ;;  %v1555_v54 = vadd.f32 %v1527_v51, %v1453_v46  ;;  %v1357_v46 = vadd.f32 %v1341_v2, %v2954_v19 }
 0x1e5   : > { %v1657_v31 = vadd.f32 %v1629_v21, %v1555_v54  ;;  %2300 = vmatmul.msk.f32.vlgmr.msra.gmra.mxu3 %vm750_vm2, %v1694_v52  ;;  %v1443_v21 = vpop.f32.mrf.mxu0 }
 0x1e6   : > { %v1459_v25 = vadd.f32 %v1443_v21, %v1357_v46 }
 0x1e7   : > { %v1671_v35 = vmul.f32 %v2965_v17, %v1657_v31 }
 0x1e9   : > { %v1632_v58 = vpop.f32.mrf.mxu2  ;;  %v1685_v60 = vadd.f32 %v2970_v23, %v1671_v35 }
 0x1ea   : > { %v1530_v61 = vpop.f32.mrf.mxu1 }
 0x1eb   : > { %v1556_v34 = vadd.f32 %v1530_v61, %v1454_v59  ;;  %v1695_v36 = vmax.f32 %v1685_v60, 0.0  ;;  %v1347_v61 = vpop.f32.mrf.mxu3 }
 0x1ec   : > { %v1359_v3 = vadd.f32 %v1347_v61, %v2960_v57 }
 0x1ed   : > { %v1658_v0 = vadd.f32 %v1632_v58, %v1556_v34  ;;  %2301 = vmatmul.msk.f32.gmra.mxu3 %vm750_vm2, %v1695_v36  ;;  %v1358_v58 = vadd.f32 %v1344_v45, %v2957_v26  ;;  %v1446_v60 = vpop.f32.mrf.mxu0 }
 0x1ef   : > { %v1672_v56 = vmul.f32 %v2965_v17, %v1658_v0  ;;  %v1460_v36 = vadd.f32 %v1446_v60, %v1358_v58 }
 0x1f1   : > { %v1635_v4 = vpop.f32.mrf.mxu2  ;;  %v1686_v40 = vadd.f32 %v2970_v23, %v1672_v56 }
 0x1f2   : > { %v1533_v44 = vpop.f32.mrf.mxu1 }
 0x1f3   : > { %v1557_v6 = vadd.f32 %v1533_v44, %v1455_v38  ;;  %v1696_v9 = vmax.f32 %v1686_v40, 0.0 }
 0x1f5   : > { %v1659_v13 = vadd.f32 %v1635_v4, %v1557_v6  ;;  %2302 = vmatmul.msk.f32.gmra.mxu3 %vm750_vm2, %v1696_v9  ;;  %v1449_v38 = vpop.f32.mrf.mxu0 }
 0x1f6   : > { %v1461_v44 = vadd.f32 %v1449_v38, %v1359_v3 }
 0x1f7   : > { %v1673_v39 = vmul.f32 %v2965_v17, %v1659_v13 }
 0x1f9   : > { %v1638_v48 = vpop.f32.mrf.mxu2  ;;  %v1687_v15 = vadd.f32 %v2970_v23, %v1673_v39 }
 0x1fa   : > { %v1536_v16 = vpop.f32.mrf.mxu1 }
 0x1fb   : > { %v1558_v49 = vadd.f32 %v1536_v16, %v1456_v14  ;;  %v1697_v53 = vmax.f32 %v1687_v15, 0.0  ;;  %v3012_v14 = vld [vmem:[%s3111_s9] ss:$0 sm:$0xff] }
 0x1fc   : > { %v3017_v15 = vld [vmem:[%s3112_s10] ss:$0 sm:$0xff] }
 0x1fd   : > { %v1660_v24 = vadd.f32 %v1638_v48, %v1558_v49  ;;  %2303 = vmatmul.msk.f32.gmra.mxu3 %vm750_vm2, %v1697_v53  ;;  %v1888_v49 = vrot.slane %v2310_v47, 2  ;;  %v1889_v53 = vrot.slane %v2310_v47, 4 }
 0x1ff   : > { %v1674_v5 = vmul.f32 %v2965_v17, %v1660_v24 }
 0x201   : > { %v1641_v27 = vpop.f32.mrf.mxu2  ;;  %v1688_v62 = vadd.f32 %v2970_v23, %v1674_v5 }
 0x202   : > { %v1539_v29 = vpop.f32.mrf.mxu1 }
 0x203   : > { %v1559_v30 = vadd.f32 %v1539_v29, %v1457_v28  ;;  %v1698_v7 = vmax.f32 %v1688_v62, 0.0 }
 0x205   : > { %v1661_v8 = vadd.f32 %v1641_v27, %v1559_v30  ;;  %2304 = vmatmul.msk.f32.gmra.mxu3 %vm750_vm2, %v1698_v7 }
 0x207   : > { %v1675_v10 = vmul.f32 %v2965_v17, %v1661_v8 }
 0x209   : > { %v1689_v18 = vadd.f32 %v2970_v23, %v1675_v10  ;;  %v1644_v33 = vpop.f32.mrf.mxu2 }
 0x20a   : > { %v1542_v41 = vpop.f32.mrf.mxu1 }
 0x20b   : > { %v1699_v12 = vmax.f32 %v1689_v18, 0.0  ;;  %v1560_v42 = vadd.f32 %v1542_v41, %v1458_v37  ;;  %v1891_v37 = vrot.slane %v2311_v32, 2  ;;  %v1892_v41 = vrot.slane %v2311_v32, 4 }
 0x20d   : > { %v1662_v51 = vadd.f32 %v1644_v33, %v1560_v42  ;;  %2305 = vmatmul.msk.f32.gmra.mxu3 %vm750_vm2, %v1699_v12 }
 0x20f   : > { %v1676_v52 = vmul.f32 %v2965_v17, %v1662_v51 }
 0x211   : > { %v1690_v54 = vadd.f32 %v2970_v23, %v1676_v52  ;;  %v1647_v55 = vpop.f32.mrf.mxu2 }
 0x212   : > { %v1545_v31 = vpop.f32.mrf.mxu1 }
 0x213   : > { %v1700_v50 = vmax.f32 %v1690_v54, 0.0  ;;  %v1561_v35 = vadd.f32 %v1545_v31, %v1459_v25  ;;  %v2312_v54 = vld [vmem:[%s2579_s26 + $0x31] sm:$0xff] }
 0x215   : > { %v1663_v59 = vadd.f32 %v1647_v55, %v1561_v35  ;;  %2306 = vmatmul.msk.f32.gmra.mxu3 %vm750_vm2, %v1700_v50  ;;  %v1893_v55 = vrot.slane %v2311_v32, 6 }
 0x217   : > { %v1677_v19 = vmul.f32 %v2965_v17, %v1663_v59  ;;  %v1894_v59 = vrot.slane %v2312_v54, 2 }
 0x219   : > { %v1691_v34 = vadd.f32 %v2970_v23, %v1677_v19  ;;  %v1650_v63 = vpop.f32.mrf.mxu2 }
 0x21a   : > { %v1548_v0 = vpop.f32.mrf.mxu1 }
 0x21b   : > { %v1701_v1 = vmax.f32 %v1691_v34, 0.0  ;;  %v1562_v56 = vadd.f32 %v1548_v0, %v1460_v36 }
 0x21d   : > { %v1664_v4 = vadd.f32 %v1650_v63, %v1562_v56  ;;  %2307 = vmatmul.msk.f32.gmra.mxu3 %vm750_vm2, %v1701_v1 }
 0x21f   : > { %v1678_v26 = vmul.f32 %v2965_v17, %v1664_v4 }
 0x221   : > { %v1692_v40 = vadd.f32 %v2970_v23, %v1678_v26  ;;  %v1653_v13 = vpop.f32.mrf.mxu2  ;;  %v1895_v26 = vrot.slane %v2312_v54, 4 }
 0x222   : > { %v1551_v6 = vpop.f32.mrf.mxu1 }
 0x223   : > { %v1702_v9 = vmax.f32 %v1692_v40, 0.0  ;;  %v1563_v11 = vadd.f32 %v1551_v6, %v1461_v44  ;;  %v1896_v40 = vrot.slane %v2312_v54, 6  ;;  %v2313_v44 = vld [vmem:[%s2579_s26 + $0x41] sm:$0xff] }
 0x225   : > { %v1665_v39 = vadd.f32 %v1653_v13, %v1563_v11  ;;  %2308 = vmatmul.msk.f32.gmra.mxu3 %vm750_vm2, %v1702_v9 }
 0x227   : > { %v1679_v43 = vmul.f32 %v2965_v17, %v1665_v39 }
 0x229   : > { %v1693_v57 = vadd.f32 %v2970_v23, %v1679_v43 }
 0x22b   : > { %v1703_v48 = vmax.f32 %v1693_v57, 0.0 }
 0x22d   : > { %2309 = vmatmul.msk.f32.gmra.mxu3 %vm750_vm2, %v1703_v48 }
 0x268   : > { %v1755_v16 = vpop.f32.mrf.mxu3 }
 0x269   : > { %v1789_v17 = vmul.f32 %v3012_v14, %v1755_v16 }
 0x26b   : > { %v1803_v23 = vadd.f32 %v3017_v15, %v1789_v17 }
 0x26d   : > { %v1823_v24 = vrot.slane %v1803_v23, 2  ;;  %v1824_v5 = vrot.slane %v1803_v23, 4  ;;  %v1825_v27 = vrot.slane %v1803_v23, 6  ;;  %v1936_v28 = vadd.f32 %v2310_v47, %v1803_v23 }
 0x26e   : > { %v1897_v23 = vrot.slane %v2313_v44, 2 }
 0x26f   : > { %v1937_v62 = vadd.f32 %v1888_v49, %v1823_v24  ;;  %v1938_v22 = vadd.f32 %v1889_v53, %v1824_v5  ;;  %v1939_v29 = vadd.f32 %v1890_v20, %v1825_v27  ;;  %v1968_v30 = vmax.f32 %v1936_v28, 0.0 }
 0x270   : > { %v1758_v7 = vpop.f32.mrf.mxu3  ;;  %v1898_v53 = vrot.slane %v2313_v44, 4  ;;  %v1899_v20 = vrot.slane %v2313_v44, 6 }
 0x271   : > { %v1969_v2 = vmax.f32 %v1937_v62, 0.0  ;;  %v1970_v8 = vmax.f32 %v1938_v22, 0.0  ;;  %v1971_v10 = vmax.f32 %v1939_v29, 0.0  ;;  %2032 = vst [vmem:[#allocation1] ss:$4 sm:$0xff] %v1968_v30  ;;  %v1790_v18 = vmul.f32 %v3012_v14, %v1758_v7  ;;  %v2314_v30 = vld [vmem:[%s2579_s26 + $0x51] sm:$0xff] }
 0x273   : > { %2034 = vst [vmem:[#allocation1 + $0x1] ss:$4 sm:$0xff] %v1969_v2  ;;  %v1804_v33 = vadd.f32 %v3017_v15, %v1790_v18  ;;  %v1900_v18 = vrot.slane %v2314_v30, 2 }
 0x274   : > { %2036 = vst [vmem:[#allocation1 + $0x2] ss:$4 sm:$0xff] %v1970_v8 }
 0x275   : > { %2038 = vst [vmem:[#allocation1 + $0x3] ss:$4 sm:$0xff] %v1971_v10  ;;  %v1826_v12 = vrot.slane %v1804_v33, 2  ;;  %v1827_v42 = vrot.slane %v1804_v33, 4  ;;  %v1828_v21 = vrot.slane %v1804_v33, 6  ;;  %v1901_v33 = vrot.slane %v2314_v30, 4 }
 0x277   : > { %v1940_v46 = vadd.f32 %v2311_v32, %v1826_v12  ;;  %v1941_v51 = vadd.f32 %v1891_v37, %v1827_v42  ;;  %v1942_v45 = vadd.f32 %v1892_v41, %v1828_v21  ;;  %v1902_v37 = vrot.slane %v2314_v30, 6 }
 0x278   : > { %v1761_v52 = vpop.f32.mrf.mxu3 }
 0x279   : > { %v1972_v25 = vmax.f32 %v1940_v46, 0.0  ;;  %v1973_v31 = vmax.f32 %v1941_v51, 0.0  ;;  %v1974_v50 = vmax.f32 %v1942_v45, 0.0  ;;  %v1791_v35 = vmul.f32 %v3012_v14, %v1761_v52 }
 0x27b   : > { %2041 = vst [vmem:[#allocation1 + $0x20] ss:$4 sm:$0xff] %v1972_v25  ;;  %v1805_v58 = vadd.f32 %v3017_v15, %v1791_v35 }
 0x27c   : > { %v2039_v60 = vld.sshfl [vmem:[#allocation1] sm:$0xff pattern:$0x73625140]  ;;  %2043 = vst [vmem:[#allocation1 + $0x21] ss:$4 sm:$0xff] %v1973_v31 }
 0x27d   : > { %2045 = vst [vmem:[#allocation1 + $0x22] ss:$4 sm:$0xff] %v1974_v50  ;;  %v1829_v19 = vrot.slane %v1805_v58, 4  ;;  %v1830_v61 = vrot.slane %v1805_v58, 6  ;;  %v1943_v34 = vadd.f32 %v1893_v55, %v1805_v58 }
 0x27e   : > { %2087 = vst.msk [vmem:[%s3031_s12] sm:$0xff] %vm529_vm0, %v2039_v60 }
 0x27f   : > { %v1944_v36 = vadd.f32 %v2312_v54, %v1829_v19  ;;  %v1945_v63 = vadd.f32 %v1894_v59, %v1830_v61  ;;  %v1975_v0 = vmax.f32 %v1943_v34, 0.0  ;;  %v2315_v54 = vld [vmem:[%s2579_s26 + $0x61] sm:$0xff] }
 0x280   : > { %v1764_v1 = vpop.f32.mrf.mxu3  ;;  %v1903_v58 = vrot.slane %v2315_v54, 2  ;;  %v1904_v19 = vrot.slane %v2315_v54, 4 }
 0x281   : > { %v1976_v56 = vmax.f32 %v1944_v36, 0.0  ;;  %v1977_v3 = vmax.f32 %v1945_v63, 0.0  ;;  %2047 = vst [vmem:[#allocation1 + $0x23] ss:$4 sm:$0xff] %v1975_v0  ;;  %v1792_v4 = vmul.f32 %v3012_v14, %v1764_v1 }
 0x283   : > { %2049 = vst [vmem:[#allocation1] ss:$4 sm:$0xff] %v1976_v56  ;;  %v1806_v38 = vadd.f32 %v3017_v15, %v1792_v4  ;;  %v1905_v4 = vrot.slane %v2315_v54, 6 }
 0x284   : > { %2050 = vst [vmem:[#allocation1 + $0x1] ss:$4 sm:$0xff] %v1977_v3  ;;  %v2316_v3 = vld [vmem:[%s2579_s26 + $0x71] sm:$0xff] }
 0x285   : > { %v1831_v6 = vrot.slane %v1806_v38, 2  ;;  %v1832_v9 = vrot.slane %v1806_v38, 6  ;;  %v1946_v11 = vadd.f32 %v1895_v26, %v1806_v38 }
 0x287   : > { %v1947_v13 = vadd.f32 %v1896_v40, %v1831_v6  ;;  %v1948_v39 = vadd.f32 %v2313_v44, %v1832_v9  ;;  %v1978_v43 = vmax.f32 %v1946_v11, 0.0  ;;  %v1906_v9 = vrot.slane %v2316_v3, 2 }
 0x288   : > { %v2048_v57 = vld.sshfl [vmem:[#allocation1 + $0x20] sm:$0xff pattern:$0x73625140]  ;;  %v1767_v48 = vpop.f32.mrf.mxu3 }
 0x289   : > { %v1979_v16 = vmax.f32 %v1947_v13, 0.0  ;;  %v1980_v47 = vmax.f32 %v1948_v39, 0.0  ;;  %2051 = vst [vmem:[#allocation1 + $0x2] ss:$4 sm:$0xff] %v1978_v43  ;;  %v1793_v17 = vmul.f32 %v3012_v14, %v1767_v48 }
 0x28a   : > { %2088 = vst.msk [vmem:[%s3031_s12 + $0x8] sm:$0xff] %vm529_vm0, %v2048_v57 }
 0x28b   : > { %2052 = vst [vmem:[#allocation1 + $0x3] ss:$4 sm:$0xff] %v1979_v16  ;;  %v1807_v49 = vadd.f32 %v3017_v15, %v1793_v17 }
 0x28c   : > { %2054 = vst [vmem:[#allocation1 + $0x20] ss:$4 sm:$0xff] %v1980_v47 }
 0x28d   : > { %v1833_v24 = vrot.slane %v1807_v49, 2  ;;  %v1834_v5 = vrot.slane %v1807_v49, 4  ;;  %v1949_v27 = vadd.f32 %v1897_v23, %v1807_v49 }
 0x28f   : > { %v1950_v28 = vadd.f32 %v1898_v53, %v1833_v24  ;;  %v1951_v62 = vadd.f32 %v1899_v20, %v1834_v5  ;;  %v1981_v22 = vmax.f32 %v1949_v27, 0.0  ;;  %v1907_v53 = vrot.slane %v2316_v3, 4  ;;  %v2317_v5 = vld [vmem:[%s2579_s26 + $0x81] sm:$0xff]  ;;  %s2323_s26 = sshll.u32 %s2529_s21, 6  ;;  %s2096_s21 = scalar_lea.sflag [#allocation4], %s377_s24 }
 0x290   : > { %v1770_v29 = vpop.f32.mrf.mxu3  ;;  %v1908_v24 = vrot.slane %v2316_v3, 6  ;;  %s2107_s15 = scalar_lea.hbm %s3113_s11, %s2323_s26 }
 0x291   : > { %v1982_v7 = vmax.f32 %v1950_v28, 0.0  ;;  %v1983_v32 = vmax.f32 %v1951_v62, 0.0  ;;  %2055 = vst [vmem:[#allocation1 + $0x21] ss:$4 sm:$0xff] %v1981_v22  ;;  %v1794_v2 = vmul.f32 %v3012_v14, %v1770_v29  ;;  %s2110_s22 = sshll.u32 %s2107_s15, 4  ;;  %s2111_s22 = int_to_ptr.hbm [resolvable:$true] %s2110_s22 }
 0x292   : > { %v2053_v8 = vld.sshfl [vmem:[#allocation1] sm:$0xff pattern:$0x73625140]  ;;  %s2394_s25 = sshra.s32 %s2111_s22, 4  ;;  %s2395_s25 = int_to_ptr.hbm [resolvable:$true] %s2394_s25 }
 0x293   : > { %2056 = vst [vmem:[#allocation1 + $0x22] ss:$4 sm:$0xff] %v1982_v7  ;;  %v1808_v10 = vadd.f32 %v3017_v15, %v1794_v2  ;;  %s2396_s29 = scalar_lea.hbm %s2395_s25, 64  ;;  %p2401_p0 = scmp.lt.s32.totalorder %s2395_s25, %s3113_s11 }
 0x294   : > { %2057 = vst [vmem:[#allocation1 + $0x23] ss:$4 sm:$0xff] %v1983_v32  ;;  %p2397_p11 = scmp.ne.s32.totalorder %s2395_s25, %s2396_s29  ;;  %p2402_p1 = scmp.lt.s32.totalorder %s2400_s13, %s2396_s29 }
 0x295   : > { %v1835_v41 = vrot.slane %v1808_v10, 2  ;;  %v1836_v12 = vrot.slane %v1808_v10, 4  ;;  %v1837_v42 = vrot.slane %v1808_v10, 6  ;;  %v1952_v21 = vadd.f32 %v2314_v30, %v1808_v10  ;;  %2089 = vst.msk [vmem:[%s3031_s12 + $0x10] sm:$0xff] %vm529_vm0, %v2053_v8 }
 0x296   : > { %p2398_p12 = pnand %p2397_p11, %p2546_p5  ;;  %p2403_p2 = por %p2402_p1, %p2401_p0 }
 0x297   : > { %v1953_v46 = vadd.f32 %v1900_v18, %v1835_v41  ;;  %v1954_v51 = vadd.f32 %v1901_v33, %v1836_v12  ;;  %v1955_v45 = vadd.f32 %v1902_v37, %v1837_v42  ;;  %v1984_v52 = vmax.f32 %v1952_v21, 0.0 }
 0x298   : > { %v1773_v55 = vpop.f32.mrf.mxu3  ;;  %v1909_v18 = vrot.slane %v2317_v5, 2  ;;  %v1910_v37 = vrot.slane %v2317_v5, 4  ;;  %v1911_v41 = vrot.slane %v2317_v5, 6  ;;  %p2399_p13 = pneg %p2398_p12 }
 0x299   : > { %v1985_v25 = vmax.f32 %v1953_v46, 0.0  ;;  %v1986_v31 = vmax.f32 %v1954_v51, 0.0  ;;  %v1987_v50 = vmax.f32 %v1955_v45, 0.0  ;;  %v1795_v35 = vmul.f32 %v3012_v14, %v1773_v55  ;;  %2059 = vst [vmem:[#allocation1] ss:$4 sm:$0xff] %v1984_v52 }
 0x29a   : > { %p2404_p3 = pnand %p2403_p2, %p2399_p13 }
 0x29b   : > { %v2058_v59 = vld.sshfl [vmem:[#allocation1 + $0x20] sm:$0xff pattern:$0x73625140]  ;;  %v1809_v60 = vadd.f32 %v3017_v15, %v1795_v35  ;;  %2060 = vst [vmem:[#allocation1 + $0x1] ss:$4 sm:$0xff] %v1985_v25 }
 0x29c   : > { %2061 = vst [vmem:[#allocation1 + $0x2] ss:$4 sm:$0xff] %v1986_v31 }
 0x29d   : > { %v1838_v61 = vrot.slane %v1809_v60, 2  ;;  %v1839_v34 = vrot.slane %v1809_v60, 4  ;;  %v1840_v36 = vrot.slane %v1809_v60, 6  ;;  %2062 = vst [vmem:[#allocation1 + $0x3] ss:$4 sm:$0xff] %v1987_v50 }
 0x29e   : > { %2090 = vst.msk [vmem:[%s3031_s12 + $0x18] sm:$0xff] %vm529_vm0, %v2058_v59 }
 0x29f   : > { %v1956_v63 = vadd.f32 %v2315_v54, %v1838_v61  ;;  %v1957_v0 = vadd.f32 %v1903_v58, %v1839_v34  ;;  %v1958_v1 = vadd.f32 %v1904_v19, %v1840_v36 }
 0x2a0   : > { %v1776_v56 = vpop.f32.mrf.mxu3 }
 0x2a1   : > { %v1988_v26 = vmax.f32 %v1956_v63, 0.0  ;;  %v1989_v38 = vmax.f32 %v1957_v0, 0.0  ;;  %v1990_v40 = vmax.f32 %v1958_v1, 0.0  ;;  %v1796_v44 = vmul.f32 %v3012_v14, %v1776_v56 }
 0x2a3   : > { %2064 = vst [vmem:[#allocation1 + $0x20] ss:$4 sm:$0xff] %v1988_v26  ;;  %v1810_v6 = vadd.f32 %v3017_v15, %v1796_v44 }
 0x2a4   : > { %2065 = vst [vmem:[#allocation1 + $0x21] ss:$4 sm:$0xff] %v1989_v38  ;;  %v2063_v11 = vld.sshfl [vmem:[#allocation1] sm:$0xff pattern:$0x73625140] }
 0x2a5   : > { %2066 = vst [vmem:[#allocation1 + $0x22] ss:$4 sm:$0xff] %v1990_v40  ;;  %v1841_v13 = vrot.slane %v1810_v6, 4  ;;  %v1842_v39 = vrot.slane %v1810_v6, 6  ;;  %v1959_v43 = vadd.f32 %v1905_v4, %v1810_v6 }
 0x2a6   : > { %2091 = vst.msk [vmem:[%s3031_s12 + $0x20] sm:$0xff] %vm529_vm0, %v2063_v11 }
 0x2a7   : > { %v1960_v57 = vadd.f32 %v2316_v3, %v1841_v13  ;;  %v1961_v48 = vadd.f32 %v1906_v9, %v1842_v39  ;;  %v1991_v16 = vmax.f32 %v1959_v43, 0.0 }
 0x2a8   : > { %v1779_v47 = vpop.f32.mrf.mxu3 }
 0x2a9   : > { %v1992_v17 = vmax.f32 %v1960_v57, 0.0  ;;  %v1993_v23 = vmax.f32 %v1961_v48, 0.0  ;;  %2067 = vst [vmem:[#allocation1 + $0x23] ss:$4 sm:$0xff] %v1991_v16  ;;  %v1797_v49 = vmul.f32 %v3012_v14, %v1779_v47 }
 0x2ab   : > { %v1811_v20 = vadd.f32 %v3017_v15, %v1797_v49  ;;  %2069 = vst [vmem:[#allocation1] ss:$4 sm:$0xff] %v1992_v17 }
 0x2ac   : > { %2070 = vst [vmem:[#allocation1 + $0x1] ss:$4 sm:$0xff] %v1993_v23 }
 0x2ad   : > { %v1843_v27 = vrot.slane %v1811_v20, 2  ;;  %v1844_v28 = vrot.slane %v1811_v20, 6  ;;  %v1962_v62 = vadd.f32 %v1907_v53, %v1811_v20 }
 0x2af   : > { %v1963_v22 = vadd.f32 %v1908_v24, %v1843_v27  ;;  %v1964_v29 = vadd.f32 %v2317_v5, %v1844_v28  ;;  %v1994_v30 = vmax.f32 %v1962_v62, 0.0 }
 0x2b0   : > { %v1782_v7 = vpop.f32.mrf.mxu3  ;;  %v2068_v32 = vld.sshfl [vmem:[#allocation1 + $0x20] sm:$0xff pattern:$0x73625140] }
 0x2b1   : > { %v1995_v2 = vmax.f32 %v1963_v22, 0.0  ;;  %v1996_v8 = vmax.f32 %v1964_v29, 0.0  ;;  %v1798_v10 = vmul.f32 %v3012_v14, %v1782_v7  ;;  %2071 = vst [vmem:[#allocation1 + $0x2] ss:$4 sm:$0xff] %v1994_v30 }
 0x2b2   : > { %2092 = vst.msk [vmem:[%s3031_s12 + $0x28] sm:$0xff] %vm529_vm0, %v2068_v32 }
 0x2b3   : > { %v1812_v33 = vadd.f32 %v3017_v15, %v1798_v10  ;;  %2072 = vst [vmem:[#allocation1 + $0x3] ss:$4 sm:$0xff] %v1995_v2 }
 0x2b4   : > { %2074 = vst [vmem:[#allocation1 + $0x20] ss:$4 sm:$0xff] %v1996_v8 }
 0x2b5   : > { %v1845_v12 = vrot.slane %v1812_v33, 2  ;;  %v1846_v42 = vrot.slane %v1812_v33, 4  ;;  %v1965_v21 = vadd.f32 %v1909_v18, %v1812_v33 }
 0x2b7   : > { %v1966_v46 = vadd.f32 %v1910_v37, %v1845_v12  ;;  %v1967_v51 = vadd.f32 %v1911_v41, %v1846_v42  ;;  %v1997_v45 = vmax.f32 %v1965_v21, 0.0 }
 0x2b9   : > { %v1998_v14 = vmax.f32 %v1966_v46, 0.0  ;;  %v1999_v52 = vmax.f32 %v1967_v51, 0.0  ;;  %2075 = vst [vmem:[#allocation1 + $0x21] ss:$4 sm:$0xff] %v1997_v45 }
 0x2ba   : > { %v2073_v54 = vld.sshfl [vmem:[#allocation1] sm:$0xff pattern:$0x73625140] }
 0x2bb   : > { %2076 = vst [vmem:[#allocation1 + $0x22] ss:$4 sm:$0xff] %v1998_v14 }
 0x2bc   : > { %2077 = vst [vmem:[#allocation1 + $0x23] ss:$4 sm:$0xff] %v1999_v52 }
 0x2bd   : > { %2093 = vst.msk [vmem:[%s3031_s12 + $0x30] sm:$0xff] %vm529_vm0, %v2073_v54 }
 0x2c3   : > { %v2078_v15 = vld.sshfl [vmem:[#allocation1 + $0x20] sm:$0xff pattern:$0x73625140] }
 0x2c4   : > { %2094 = vst.msk [vmem:[%s3031_s12 + $0x38] sm:$0xff] %vm529_vm0, %v2078_v15 }
 0x2c5   : > { %2407 = shalt.err (!%p2404_p3)
}
 0x2c6   : > { %s2446_s24 = smov 128   ;;  %s2447_s12 = smov 8  }
 0x2c7   : > { %2328 = dma.vmem_to_hbm [thread:$0]  (%p2546_p5), %s2109_s16, 1024, %s2111_s22, %s2096_s21, %s2446_s24, %s2446_s24, %s2447_s12  }
 0x2c8 PF: > { %p2334_p4 = scmp.ge.s32.totalorder %s2442_s20, 2  ;;  %s2125_s30 = sand.u32 1, %s2430_s17  }
 0x2c9   : > { %s2126_s26 = scalar_lea.sflag [#allocation4], %s2125_s30 }
 0x2ca   : > { %p2331_p7 = pnand %p2334_p4, %p2550_p6 }
 0x2cc   : > { %p2332_p8 = pneg %p2331_p7 }
 0x2ce   : > { %2425 = dma.done.wait (%p2332_p8), %s2126_s26, 1024  }
 0x2cf   : > { %2427 = vsyncadd (%p2332_p8), %s2126_s26, 4294966272  ;;  %s3117_s25 = sld [smem:[#allocation6_spill]]  ;;  %p21_p9 = scmp.ge.s32.totalorder %s2533_s23, 4  }
 0x2d0   : > { %s3118_s17 = smov %s2434_s18  ;;  %s3119_s18 = smov %s2438_s19 }
 0x2d1   : > { %s3121_s20 = smov %s2533_s23  ;;  %23 = sbr.rel (!%p21_p9) target bundleno = 3 (0x3), region = 122 }
 0x2d5   : > { %s3120_s19 = smov %s3117_s25 }
 0x2d6   :  { %2132 = vsyncpa [#allocation4], 1 }
 0x2d7   :  { %2134 = vsyncpa [#allocation4 + $0x1], 1 }

</bundles_post_ra>
